<compile_context>
chip_gen: v5e
topology: v5e:2x2
jax: 0.10.0
libtpu: 0.0.40
codegen_flags: <defaults>
</compile_context>

<pallas_src>
import functools
from typing import NamedTuple

import jax
import jax.numpy as jnp
from jax.experimental import pallas as pl
from jax.experimental.pallas import tpu as pltpu


def _round_up(x, m):
    return ((x + m - 1) // m) * m


class Meta(NamedTuple):
    T: int
    B: int
    B_pad: int
    Hp: int
    Lp: int
    num_labels: int


def gru_cls_kernel(int_ref, tab_ref, whl_ref, bias_ref, out_ref,
                   *, T, B_pad, Hp, Lp, n_real):
    """Fused embedding-lookup + GRU recurrence + linear head + CrossEntropyLoss.

    int_ref:  (T*B_pad + 2*B_pad, 1) int32
              rows [0, T*B_pad)       time-major token ids (pad batch rows = 0)
              rows [.., +B_pad)       sequence lengths     (pad rows = 0 -> h frozen at 0)
              rows [.., +B_pad)       labels               (pad rows = Lp -> zero one-hot)
    tab_ref:  (Vp, G)     table_g = emb @ [W_ir|W_iz|W_in] + fused bias, per-gate 128-lane padded
    whl_ref:  (Hp, G+Lp)  cols [0,G): fused [W_hr|W_hz|W_hn]; cols [G,G+Lp): W_lin
    bias_ref: (8, max(Hp,Lp)) row 0: b_hn (zero-padded), row 1: b_lin (pad cols = -1e30)
    out_ref:  (2*B_pad, Lp)   rows [0,B_pad): logits, rows [B_pad,2*B_pad): loss broadcast
    """
    G = 3 * Hp
    TB = T * B_pad
    Vp = tab_ref.shape[0]

    ids = int_ref[0:TB, :]                      # (TB, 1) int32
    lens = int_ref[TB:TB + B_pad, :]            # (B_pad, 1) int32
    labs = int_ref[TB + B_pad:TB + 2 * B_pad, :]

    # In-kernel embedding lookup fused with the input-side gate projection:
    # gx[t*B_pad+b] = emb[id] @ W_i + bias  ==  one_hot(id) @ table_g.
    oh_ids = (jax.lax.broadcasted_iota(jnp.int32, (TB, Vp), 1) == ids)
    gx = jnp.dot(oh_ids.astype(jnp.float32), tab_ref[...],
                 preferred_element_type=jnp.float32)            # (TB, G)

    # Hoisted out of the recurrence (single ref get; review item #1).
    wh = whl_ref[:, 0:G]                                        # (Hp, G)
    wlin = whl_ref[:, G:G + Lp]                                 # (Hp, Lp)
    bhn = jnp.broadcast_to(bias_ref[0:1, 0:Hp], (B_pad, Hp))    # hoisted broadcast
    blin = bias_ref[1:2, 0:Lp]                                  # (1, Lp)

    # TODO(synk): at larger H/B, drive the MXU weight-stationary with
    # pltpu.matmul_push_rhs / matmul_acc_lhs / matmul_pop so W_h is pushed once
    # for all T steps; at Hp=128 jnp.dot is fine.
    h = jnp.zeros((B_pad, Hp), jnp.float32)       # pad lanes stay exactly 0

    # T is small & static -> fully unrolled serial recurrence; every slice below
    # is sublane- (B_pad=8) and lane- (per-gate 128) aligned.
    for t in range(T):
        gx_t = gx[t * B_pad:(t + 1) * B_pad, :]                 # (B_pad, G)
        gh = jnp.dot(h, wh, preferred_element_type=jnp.float32)  # only per-step matmul
        r = jax.nn.sigmoid(gx_t[:, 0:Hp] + gh[:, 0:Hp])
        z = jax.nn.sigmoid(gx_t[:, Hp:2 * Hp] + gh[:, Hp:2 * Hp])
        n = jnp.tanh(gx_t[:, 2 * Hp:3 * Hp] + r * (gh[:, 2 * Hp:3 * Hp] + bhn))
        h_new = n + z * (h - n)
        # pack_padded_sequence semantics: freeze h once t >= length_b.
        h = jnp.where(t < lens, h_new, h)

    # Classifier head (lane-dense; pad label columns carry bias -1e30).
    logits = jnp.dot(h, wlin, preferred_element_type=jnp.float32) + blin   # (B_pad, Lp)

    # CrossEntropyLoss (mean over the real batch). Padded label columns vanish
    # from the softmax; padded batch rows have an all-zero one-hot.
    m = jnp.max(logits, axis=-1, keepdims=True)
    lse = jnp.log(jnp.sum(jnp.exp(logits - m), axis=-1, keepdims=True)) + m
    lab_oh = (jax.lax.broadcasted_iota(jnp.int32, (B_pad, Lp), 1) == labs)
    nll_rows = jnp.sum(lab_oh.astype(jnp.float32) * (lse - logits),
                       axis=-1, keepdims=True)                   # (B_pad, 1)
    loss = jnp.sum(nll_rows, axis=0, keepdims=True) * (1.0 / n_real)   # (1, 1)

    out_ref[0:B_pad, :] = logits
    out_ref[B_pad:2 * B_pad, :] = jnp.broadcast_to(loss, (B_pad, Lp))


def prepare_gru_cls_params(params, *, T, B, num_labels):
    """One-time parameter fusion / padding. Cache the result; do NOT rebuild per call."""
    emb = params["embedding"].astype(jnp.float32)               # (V, E)
    V, _E = emb.shape
    H = params["whr"].shape[0]
    Hp = 128                      # per-gate lane width
    G = 3 * Hp
    Vp = _round_up(V, 128)
    Lp = _round_up(num_labels, 128)
    B_pad = _round_up(B, 8)
    Wb = max(Hp, Lp)

    def pad_gate(w):              # (rows, H) -> (rows, Hp), zero pad columns
        return jnp.pad(w, ((0, 0), (0, Hp - w.shape[1])))

    # Fused per-gate-padded input projection applied to the whole embedding
    # table: table_g[v] = emb[v] @ [W_ir|W_iz|W_in] + [b_ir+b_hr | b_iz+b_hz | b_in]
    wi = jnp.concatenate([pad_gate(params["wir"]),
                          pad_gate(params["wiz"]),
                          pad_gate(params["win"])], axis=1)      # (E, G)
    bi = jnp.concatenate([pad_gate(params["bir"] + params["bhr"]),
                          pad_gate(params["biz"] + params["bhz"]),
                          pad_gate(params["bin"])], axis=1)      # (1, G)
    emb_p = jnp.pad(emb, ((0, Vp - V), (0, 0)))
    table_g = jnp.dot(emb_p, wi, preferred_element_type=jnp.float32) + bi   # (Vp, G)

    def pad_hh(w):                # (H, H) -> (Hp, Hp): zero K-rows & gate columns
        return jnp.pad(w, ((0, Hp - H), (0, Hp - H)))

    wh = jnp.concatenate([pad_hh(params["whr"]),
                          pad_hh(params["whz"]),
                          pad_hh(params["whn"])], axis=1)        # (Hp, G)
    wlin = jnp.pad(params["wlin"],
                   ((0, Hp - H), (0, Lp - num_labels)))          # (Hp, Lp)
    whlin = jnp.concatenate([wh, wlin], axis=1)                  # (Hp, G+Lp)

    bias2 = jnp.zeros((8, Wb), jnp.float32)
    bias2 = bias2.at[0, :H].set(params["bhn"][0])
    bias2 = bias2.at[1, :num_labels].set(params["blin"][0])
    bias2 = bias2.at[1, num_labels:Lp].set(-1e30)

    meta = Meta(T=T, B=B, B_pad=B_pad, Hp=Hp, Lp=Lp, num_labels=num_labels)
    return {"meta": meta, "table_g": table_g, "whlin": whlin, "bias2": bias2}


@functools.partial(jax.jit, static_argnums=(0,))
def _gru_cls_forward_impl(meta, table_g, whlin, bias2, input_ids, input_mask, labels):
    T, B, B_pad, Hp, Lp, L = meta

    # Per-call integer side-inputs packed into ONE small int32 array (1 DMA).
    ids_tm = jnp.pad(input_ids.T.astype(jnp.int32), ((0, 0), (0, B_pad - B)))   # (T, B_pad)
    lengths = jnp.pad(jnp.sum((input_mask == 1).astype(jnp.int32), axis=1),
                      (0, B_pad - B))                                           # pad rows -> 0
    labs = jnp.pad(labels.astype(jnp.int32), (0, B_pad - B),
                   constant_values=Lp)                                          # pad rows -> no match
    int_in = jnp.concatenate([ids_tm.reshape(T * B_pad), lengths, labs]).reshape(-1, 1)

    kernel = functools.partial(gru_cls_kernel, T=T, B_pad=B_pad, Hp=Hp, Lp=Lp, n_real=B)
    vmem = pl.BlockSpec(memory_space=pltpu.MemorySpace.VMEM)

    # TODO(synk): at production batch sizes, add a batch-tile grid with
    # dimension_semantics=("parallel",) + per-tile partial loss so the
    # recurrence shards across v7x's two TensorCores and gx stays within v7x's
    # 64 MiB VMEM; cast MXU operands to bf16 on v6e/v7x at scale. No-op at B=2.
    out = pl.pallas_call(
        kernel,
        out_shape=jax.ShapeDtypeStruct((2 * B_pad, Lp), jnp.float32),
        in_specs=[vmem, vmem, vmem, vmem],
        out_specs=vmem,
    )(int_in, table_g, whlin, bias2)

    loss = out[B_pad, 0]
    logits = out[:B, :L]
    return loss, logits


def gru_cls_forward(prepared, input_ids, input_mask, labels):
    return _gru_cls_forward_impl(prepared["meta"], prepared["table_g"],
                                 prepared["whlin"], prepared["bias2"],
                                 input_ids, input_mask, labels)


if __name__ == "__main__":
    # Small shapes consistent with the module's forward.
    V, E, H, L = 50, 32, 32, 2   # vocab, embedding_size, hidden_size, num_labels
    B, T = 2, 8                  # batch, seq length

    key = jax.random.PRNGKey(0)
    keys = jax.random.split(key, 20)
    s = 1.0 / (float(H) ** 0.5)

    def u(k, shape):
        return jax.random.uniform(k, shape, jnp.float32, -s, s)

    # Deterministic synthetic parameters (PyTorch-style uniform(-1/sqrt(H), 1/sqrt(H))).
    # Only forward-direction GRU weights are materialized: the backward direction
    # of the bidirectional GRU never reaches the output path (head uses h_n[0]).
    params = {
        "embedding": jax.random.normal(keys[0], (V, E), jnp.float32),
        "wir": u(keys[1], (E, H)), "wiz": u(keys[2], (E, H)), "win": u(keys[3], (E, H)),
        "whr": u(keys[4], (H, H)), "whz": u(keys[5], (H, H)), "whn": u(keys[6], (H, H)),
        "bir": u(keys[7], (1, H)), "biz": u(keys[8], (1, H)), "bin": u(keys[9], (1, H)),
        "bhr": u(keys[10], (1, H)), "bhz": u(keys[11], (1, H)), "bhn": u(keys[12], (1, H)),
        "wlin": u(keys[13], (H, L)), "blin": u(keys[14], (1, L)),
    }

    input_ids = jax.random.randint(keys[15], (B, T), 0, V, dtype=jnp.int32)
    seq_lens = jnp.array([T, T - 3], dtype=jnp.int32)   # variable lengths (all > 0)
    input_mask = (jnp.arange(T)[None, :] < seq_lens[:, None]).astype(jnp.int32)
    labels = jnp.array([1, 0], dtype=jnp.int32)

    prepared = prepare_gru_cls_params(params, T=T, B=B, num_labels=L)   # do once, cache
    loss, logits = gru_cls_forward(prepared, input_ids, input_mask, labels)
    jax.block_until_ready((loss, logits))
    # TODO(synk): GRU dropout=0.1 is a no-op with num_layers=1, so it is intentionally omitted.
    print("KERNEL_OK")
</pallas_src>

<mosaic_0001>
module attributes {stable_mosaic.version = 11 : i64} {
  func.func @gru_cls_kernel(%arg0: memref<80x1xi32, #tpu.memory_space<vmem>>, %arg1: memref<128x384xf32, #tpu.memory_space<vmem>>, %arg2: memref<128x512xf32, #tpu.memory_space<vmem>>, %arg3: memref<8x128xf32, #tpu.memory_space<vmem>>, %arg4: memref<16x128xf32, #tpu.memory_space<vmem>>) attributes {dimension_semantics = [], scalar_prefetch = 0 : i64, scratch_operands = 0 : i64, tpu.core_type = #tpu.core_type<tc>} {
    %c0 = arith.constant 0 : index
    %c0_0 = arith.constant 0 : index
    %0 = vector.load %arg0[%c0, %c0_0] : memref<80x1xi32, #tpu.memory_space<vmem>>, vector<64x1xi32>
    %c64 = arith.constant 64 : index
    %c0_1 = arith.constant 0 : index
    %1 = vector.load %arg0[%c64, %c0_1] : memref<80x1xi32, #tpu.memory_space<vmem>>, vector<8x1xi32>
    %c72 = arith.constant 72 : index
    %c0_2 = arith.constant 0 : index
    %2 = vector.load %arg0[%c72, %c0_2] : memref<80x1xi32, #tpu.memory_space<vmem>>, vector<8x1xi32>
    %3 = tpu.iota {dimensions = array<i32: 1>} : vector<64x128xi32>
    %4 = vector.broadcast %0 : vector<64x1xi32> to vector<64x128xi32>
    %5 = arith.cmpi eq, %3, %4 : vector<64x128xi32>
    %6 = arith.extui %5 : vector<64x128xi1> to vector<64x128xi32>
    %7 = arith.sitofp %6 : vector<64x128xi32> to vector<64x128xf32>
    %c0_3 = arith.constant 0 : index
    %c0_4 = arith.constant 0 : index
    %8 = vector.load %arg1[%c0_3, %c0_4] : memref<128x384xf32, #tpu.memory_space<vmem>>, vector<128x384xf32>
    %cst = arith.constant dense<0.000000e+00> : vector<64x384xf32>
    %9 = tpu.matmul %7, %8, %cst {dimension_numbers = #tpu.dot_dimension_numbers<[1], [0], [0], [1], [0, 0, 1, 1], [], []>} : vector<64x128xf32>, vector<128x384xf32>, vector<64x384xf32> -> vector<64x384xf32>
    %c0_5 = arith.constant 0 : index
    %c0_6 = arith.constant 0 : index
    %10 = vector.load %arg2[%c0_5, %c0_6] : memref<128x512xf32, #tpu.memory_space<vmem>>, vector<128x384xf32>
    %c0_7 = arith.constant 0 : index
    %c384 = arith.constant 384 : index
    %11 = vector.load %arg2[%c0_7, %c384] : memref<128x512xf32, #tpu.memory_space<vmem>>, vector<128x128xf32>
    %c0_8 = arith.constant 0 : index
    %c0_9 = arith.constant 0 : index
    %12 = vector.load %arg3[%c0_8, %c0_9] : memref<8x128xf32, #tpu.memory_space<vmem>>, vector<1x128xf32>
    %13 = vector.shape_cast %12 : vector<1x128xf32> to vector<1x128xf32>
    %14 = vector.broadcast %13 : vector<1x128xf32> to vector<8x128xf32>
    %c1 = arith.constant 1 : index
    %c0_10 = arith.constant 0 : index
    %15 = vector.load %arg3[%c1, %c0_10] : memref<8x128xf32, #tpu.memory_space<vmem>>, vector<1x128xf32>
    %cst_11 = arith.constant 0.000000e+00 : f32
    %16 = vector.broadcast %cst_11 : f32 to vector<8x128xf32>
    %17 = vector.extract_strided_slice %9 {offsets = [0, 0], sizes = [8, 384], strides = [1, 1]} : vector<64x384xf32> to vector<8x384xf32>
    %cst_12 = arith.constant dense<0.000000e+00> : vector<8x384xf32>
    %18 = tpu.matmul %16, %10, %cst_12 {dimension_numbers = #tpu.dot_dimension_numbers<[1], [0], [0], [1], [0, 0, 1, 1], [], []>} : vector<8x128xf32>, vector<128x384xf32>, vector<8x384xf32> -> vector<8x384xf32>
    %19 = vector.extract_strided_slice %17 {offsets = [0, 0], sizes = [8, 128], strides = [1, 1]} : vector<8x384xf32> to vector<8x128xf32>
    %20 = vector.extract_strided_slice %18 {offsets = [0, 0], sizes = [8, 128], strides = [1, 1]} : vector<8x384xf32> to vector<8x128xf32>
    %21 = arith.addf %19, %20 : vector<8x128xf32>
    %22 = arith.negf %21 : vector<8x128xf32>
    %23 = math.exp %22 : vector<8x128xf32>
    %cst_13 = arith.constant 1.000000e+00 : f32
    %24 = vector.broadcast %cst_13 : f32 to vector<8x128xf32>
    %25 = arith.addf %24, %23 : vector<8x128xf32>
    %26 = arith.divf %24, %25 : vector<8x128xf32>
    %27 = vector.extract_strided_slice %17 {offsets = [0, 128], sizes = [8, 128], strides = [1, 1]} : vector<8x384xf32> to vector<8x128xf32>
    %28 = vector.extract_strided_slice %18 {offsets = [0, 128], sizes = [8, 128], strides = [1, 1]} : vector<8x384xf32> to vector<8x128xf32>
    %29 = arith.addf %27, %28 : vector<8x128xf32>
    %30 = arith.negf %29 : vector<8x128xf32>
    %31 = math.exp %30 : vector<8x128xf32>
    %cst_14 = arith.constant 1.000000e+00 : f32
    %32 = vector.broadcast %cst_14 : f32 to vector<8x128xf32>
    %33 = arith.addf %32, %31 : vector<8x128xf32>
    %34 = arith.divf %32, %33 : vector<8x128xf32>
    %35 = vector.extract_strided_slice %17 {offsets = [0, 256], sizes = [8, 128], strides = [1, 1]} : vector<8x384xf32> to vector<8x128xf32>
    %36 = vector.extract_strided_slice %18 {offsets = [0, 256], sizes = [8, 128], strides = [1, 1]} : vector<8x384xf32> to vector<8x128xf32>
    %37 = arith.addf %36, %14 : vector<8x128xf32>
    %38 = arith.mulf %26, %37 : vector<8x128xf32>
    %39 = arith.addf %35, %38 : vector<8x128xf32>
    %40 = math.tanh %39 : vector<8x128xf32>
    %41 = arith.subf %16, %40 : vector<8x128xf32>
    %42 = arith.mulf %34, %41 : vector<8x128xf32>
    %43 = arith.addf %40, %42 : vector<8x128xf32>
    %c0_i32 = arith.constant 0 : i32
    %44 = vector.broadcast %c0_i32 : i32 to vector<8x1xi32>
    %45 = arith.cmpi sgt, %1, %44 : vector<8x1xi32>
    %46 = vector.shape_cast %45 : vector<8x1xi1> to vector<8x1xi1>
    %47 = vector.broadcast %46 : vector<8x1xi1> to vector<8x128xi1>
    %48 = arith.select %47, %43, %16 : vector<8x128xi1>, vector<8x128xf32>
    %49 = vector.extract_strided_slice %9 {offsets = [8, 0], sizes = [8, 384], strides = [1, 1]} : vector<64x384xf32> to vector<8x384xf32>
    %cst_15 = arith.constant dense<0.000000e+00> : vector<8x384xf32>
    %50 = tpu.matmul %48, %10, %cst_15 {dimension_numbers = #tpu.dot_dimension_numbers<[1], [0], [0], [1], [0, 0, 1, 1], [], []>} : vector<8x128xf32>, vector<128x384xf32>, vector<8x384xf32> -> vector<8x384xf32>
    %51 = vector.extract_strided_slice %49 {offsets = [0, 0], sizes = [8, 128], strides = [1, 1]} : vector<8x384xf32> to vector<8x128xf32>
    %52 = vector.extract_strided_slice %50 {offsets = [0, 0], sizes = [8, 128], strides = [1, 1]} : vector<8x384xf32> to vector<8x128xf32>
    %53 = arith.addf %51, %52 : vector<8x128xf32>
    %54 = arith.negf %53 : vector<8x128xf32>
    %55 = math.exp %54 : vector<8x128xf32>
    %cst_16 = arith.constant 1.000000e+00 : f32
    %56 = vector.broadcast %cst_16 : f32 to vector<8x128xf32>
    %57 = arith.addf %56, %55 : vector<8x128xf32>
    %58 = arith.divf %56, %57 : vector<8x128xf32>
    %59 = vector.extract_strided_slice %49 {offsets = [0, 128], sizes = [8, 128], strides = [1, 1]} : vector<8x384xf32> to vector<8x128xf32>
    %60 = vector.extract_strided_slice %50 {offsets = [0, 128], sizes = [8, 128], strides = [1, 1]} : vector<8x384xf32> to vector<8x128xf32>
    %61 = arith.addf %59, %60 : vector<8x128xf32>
    %62 = arith.negf %61 : vector<8x128xf32>
    %63 = math.exp %62 : vector<8x128xf32>
    %cst_17 = arith.constant 1.000000e+00 : f32
    %64 = vector.broadcast %cst_17 : f32 to vector<8x128xf32>
    %65 = arith.addf %64, %63 : vector<8x128xf32>
    %66 = arith.divf %64, %65 : vector<8x128xf32>
    %67 = vector.extract_strided_slice %49 {offsets = [0, 256], sizes = [8, 128], strides = [1, 1]} : vector<8x384xf32> to vector<8x128xf32>
    %68 = vector.extract_strided_slice %50 {offsets = [0, 256], sizes = [8, 128], strides = [1, 1]} : vector<8x384xf32> to vector<8x128xf32>
    %69 = arith.addf %68, %14 : vector<8x128xf32>
    %70 = arith.mulf %58, %69 : vector<8x128xf32>
    %71 = arith.addf %67, %70 : vector<8x128xf32>
    %72 = math.tanh %71 : vector<8x128xf32>
    %73 = arith.subf %48, %72 : vector<8x128xf32>
    %74 = arith.mulf %66, %73 : vector<8x128xf32>
    %75 = arith.addf %72, %74 : vector<8x128xf32>
    %c1_i32 = arith.constant 1 : i32
    %76 = vector.broadcast %c1_i32 : i32 to vector<8x1xi32>
    %77 = arith.cmpi sgt, %1, %76 : vector<8x1xi32>
    %78 = vector.shape_cast %77 : vector<8x1xi1> to vector<8x1xi1>
    %79 = vector.broadcast %78 : vector<8x1xi1> to vector<8x128xi1>
    %80 = arith.select %79, %75, %48 : vector<8x128xi1>, vector<8x128xf32>
    %81 = vector.extract_strided_slice %9 {offsets = [16, 0], sizes = [8, 384], strides = [1, 1]} : vector<64x384xf32> to vector<8x384xf32>
    %cst_18 = arith.constant dense<0.000000e+00> : vector<8x384xf32>
    %82 = tpu.matmul %80, %10, %cst_18 {dimension_numbers = #tpu.dot_dimension_numbers<[1], [0], [0], [1], [0, 0, 1, 1], [], []>} : vector<8x128xf32>, vector<128x384xf32>, vector<8x384xf32> -> vector<8x384xf32>
    %83 = vector.extract_strided_slice %81 {offsets = [0, 0], sizes = [8, 128], strides = [1, 1]} : vector<8x384xf32> to vector<8x128xf32>
    %84 = vector.extract_strided_slice %82 {offsets = [0, 0], sizes = [8, 128], strides = [1, 1]} : vector<8x384xf32> to vector<8x128xf32>
    %85 = arith.addf %83, %84 : vector<8x128xf32>
    %86 = arith.negf %85 : vector<8x128xf32>
    %87 = math.exp %86 : vector<8x128xf32>
    %cst_19 = arith.constant 1.000000e+00 : f32
    %88 = vector.broadcast %cst_19 : f32 to vector<8x128xf32>
    %89 = arith.addf %88, %87 : vector<8x128xf32>
    %90 = arith.divf %88, %89 : vector<8x128xf32>
    %91 = vector.extract_strided_slice %81 {offsets = [0, 128], sizes = [8, 128], strides = [1, 1]} : vector<8x384xf32> to vector<8x128xf32>
    %92 = vector.extract_strided_slice %82 {offsets = [0, 128], sizes = [8, 128], strides = [1, 1]} : vector<8x384xf32> to vector<8x128xf32>
    %93 = arith.addf %91, %92 : vector<8x128xf32>
    %94 = arith.negf %93 : vector<8x128xf32>
    %95 = math.exp %94 : vector<8x128xf32>
    %cst_20 = arith.constant 1.000000e+00 : f32
    %96 = vector.broadcast %cst_20 : f32 to vector<8x128xf32>
    %97 = arith.addf %96, %95 : vector<8x128xf32>
    %98 = arith.divf %96, %97 : vector<8x128xf32>
    %99 = vector.extract_strided_slice %81 {offsets = [0, 256], sizes = [8, 128], strides = [1, 1]} : vector<8x384xf32> to vector<8x128xf32>
    %100 = vector.extract_strided_slice %82 {offsets = [0, 256], sizes = [8, 128], strides = [1, 1]} : vector<8x384xf32> to vector<8x128xf32>
    %101 = arith.addf %100, %14 : vector<8x128xf32>
    %102 = arith.mulf %90, %101 : vector<8x128xf32>
    %103 = arith.addf %99, %102 : vector<8x128xf32>
    %104 = math.tanh %103 : vector<8x128xf32>
    %105 = arith.subf %80, %104 : vector<8x128xf32>
    %106 = arith.mulf %98, %105 : vector<8x128xf32>
    %107 = arith.addf %104, %106 : vector<8x128xf32>
    %c2_i32 = arith.constant 2 : i32
    %108 = vector.broadcast %c2_i32 : i32 to vector<8x1xi32>
    %109 = arith.cmpi sgt, %1, %108 : vector<8x1xi32>
    %110 = vector.shape_cast %109 : vector<8x1xi1> to vector<8x1xi1>
    %111 = vector.broadcast %110 : vector<8x1xi1> to vector<8x128xi1>
    %112 = arith.select %111, %107, %80 : vector<8x128xi1>, vector<8x128xf32>
    %113 = vector.extract_strided_slice %9 {offsets = [24, 0], sizes = [8, 384], strides = [1, 1]} : vector<64x384xf32> to vector<8x384xf32>
    %cst_21 = arith.constant dense<0.000000e+00> : vector<8x384xf32>
    %114 = tpu.matmul %112, %10, %cst_21 {dimension_numbers = #tpu.dot_dimension_numbers<[1], [0], [0], [1], [0, 0, 1, 1], [], []>} : vector<8x128xf32>, vector<128x384xf32>, vector<8x384xf32> -> vector<8x384xf32>
    %115 = vector.extract_strided_slice %113 {offsets = [0, 0], sizes = [8, 128], strides = [1, 1]} : vector<8x384xf32> to vector<8x128xf32>
    %116 = vector.extract_strided_slice %114 {offsets = [0, 0], sizes = [8, 128], strides = [1, 1]} : vector<8x384xf32> to vector<8x128xf32>
    %117 = arith.addf %115, %116 : vector<8x128xf32>
    %118 = arith.negf %117 : vector<8x128xf32>
    %119 = math.exp %118 : vector<8x128xf32>
    %cst_22 = arith.constant 1.000000e+00 : f32
    %120 = vector.broadcast %cst_22 : f32 to vector<8x128xf32>
    %121 = arith.addf %120, %119 : vector<8x128xf32>
    %122 = arith.divf %120, %121 : vector<8x128xf32>
    %123 = vector.extract_strided_slice %113 {offsets = [0, 128], sizes = [8, 128], strides = [1, 1]} : vector<8x384xf32> to vector<8x128xf32>
    %124 = vector.extract_strided_slice %114 {offsets = [0, 128], sizes = [8, 128], strides = [1, 1]} : vector<8x384xf32> to vector<8x128xf32>
    %125 = arith.addf %123, %124 : vector<8x128xf32>
    %126 = arith.negf %125 : vector<8x128xf32>
    %127 = math.exp %126 : vector<8x128xf32>
    %cst_23 = arith.constant 1.000000e+00 : f32
    %128 = vector.broadcast %cst_23 : f32 to vector<8x128xf32>
    %129 = arith.addf %128, %127 : vector<8x128xf32>
    %130 = arith.divf %128, %129 : vector<8x128xf32>
    %131 = vector.extract_strided_slice %113 {offsets = [0, 256], sizes = [8, 128], strides = [1, 1]} : vector<8x384xf32> to vector<8x128xf32>
    %132 = vector.extract_strided_slice %114 {offsets = [0, 256], sizes = [8, 128], strides = [1, 1]} : vector<8x384xf32> to vector<8x128xf32>
    %133 = arith.addf %132, %14 : vector<8x128xf32>
    %134 = arith.mulf %122, %133 : vector<8x128xf32>
    %135 = arith.addf %131, %134 : vector<8x128xf32>
    %136 = math.tanh %135 : vector<8x128xf32>
    %137 = arith.subf %112, %136 : vector<8x128xf32>
    %138 = arith.mulf %130, %137 : vector<8x128xf32>
    %139 = arith.addf %136, %138 : vector<8x128xf32>
    %c3_i32 = arith.constant 3 : i32
    %140 = vector.broadcast %c3_i32 : i32 to vector<8x1xi32>
    %141 = arith.cmpi sgt, %1, %140 : vector<8x1xi32>
    %142 = vector.shape_cast %141 : vector<8x1xi1> to vector<8x1xi1>
    %143 = vector.broadcast %142 : vector<8x1xi1> to vector<8x128xi1>
    %144 = arith.select %143, %139, %112 : vector<8x128xi1>, vector<8x128xf32>
    %145 = vector.extract_strided_slice %9 {offsets = [32, 0], sizes = [8, 384], strides = [1, 1]} : vector<64x384xf32> to vector<8x384xf32>
    %cst_24 = arith.constant dense<0.000000e+00> : vector<8x384xf32>
    %146 = tpu.matmul %144, %10, %cst_24 {dimension_numbers = #tpu.dot_dimension_numbers<[1], [0], [0], [1], [0, 0, 1, 1], [], []>} : vector<8x128xf32>, vector<128x384xf32>, vector<8x384xf32> -> vector<8x384xf32>
    %147 = vector.extract_strided_slice %145 {offsets = [0, 0], sizes = [8, 128], strides = [1, 1]} : vector<8x384xf32> to vector<8x128xf32>
    %148 = vector.extract_strided_slice %146 {offsets = [0, 0], sizes = [8, 128], strides = [1, 1]} : vector<8x384xf32> to vector<8x128xf32>
    %149 = arith.addf %147, %148 : vector<8x128xf32>
    %150 = arith.negf %149 : vector<8x128xf32>
    %151 = math.exp %150 : vector<8x128xf32>
    %cst_25 = arith.constant 1.000000e+00 : f32
    %152 = vector.broadcast %cst_25 : f32 to vector<8x128xf32>
    %153 = arith.addf %152, %151 : vector<8x128xf32>
    %154 = arith.divf %152, %153 : vector<8x128xf32>
    %155 = vector.extract_strided_slice %145 {offsets = [0, 128], sizes = [8, 128], strides = [1, 1]} : vector<8x384xf32> to vector<8x128xf32>
    %156 = vector.extract_strided_slice %146 {offsets = [0, 128], sizes = [8, 128], strides = [1, 1]} : vector<8x384xf32> to vector<8x128xf32>
    %157 = arith.addf %155, %156 : vector<8x128xf32>
    %158 = arith.negf %157 : vector<8x128xf32>
    %159 = math.exp %158 : vector<8x128xf32>
    %cst_26 = arith.constant 1.000000e+00 : f32
    %160 = vector.broadcast %cst_26 : f32 to vector<8x128xf32>
    %161 = arith.addf %160, %159 : vector<8x128xf32>
    %162 = arith.divf %160, %161 : vector<8x128xf32>
    %163 = vector.extract_strided_slice %145 {offsets = [0, 256], sizes = [8, 128], strides = [1, 1]} : vector<8x384xf32> to vector<8x128xf32>
    %164 = vector.extract_strided_slice %146 {offsets = [0, 256], sizes = [8, 128], strides = [1, 1]} : vector<8x384xf32> to vector<8x128xf32>
    %165 = arith.addf %164, %14 : vector<8x128xf32>
    %166 = arith.mulf %154, %165 : vector<8x128xf32>
    %167 = arith.addf %163, %166 : vector<8x128xf32>
    %168 = math.tanh %167 : vector<8x128xf32>
    %169 = arith.subf %144, %168 : vector<8x128xf32>
    %170 = arith.mulf %162, %169 : vector<8x128xf32>
    %171 = arith.addf %168, %170 : vector<8x128xf32>
    %c4_i32 = arith.constant 4 : i32
    %172 = vector.broadcast %c4_i32 : i32 to vector<8x1xi32>
    %173 = arith.cmpi sgt, %1, %172 : vector<8x1xi32>
    %174 = vector.shape_cast %173 : vector<8x1xi1> to vector<8x1xi1>
    %175 = vector.broadcast %174 : vector<8x1xi1> to vector<8x128xi1>
    %176 = arith.select %175, %171, %144 : vector<8x128xi1>, vector<8x128xf32>
    %177 = vector.extract_strided_slice %9 {offsets = [40, 0], sizes = [8, 384], strides = [1, 1]} : vector<64x384xf32> to vector<8x384xf32>
    %cst_27 = arith.constant dense<0.000000e+00> : vector<8x384xf32>
    %178 = tpu.matmul %176, %10, %cst_27 {dimension_numbers = #tpu.dot_dimension_numbers<[1], [0], [0], [1], [0, 0, 1, 1], [], []>} : vector<8x128xf32>, vector<128x384xf32>, vector<8x384xf32> -> vector<8x384xf32>
    %179 = vector.extract_strided_slice %177 {offsets = [0, 0], sizes = [8, 128], strides = [1, 1]} : vector<8x384xf32> to vector<8x128xf32>
    %180 = vector.extract_strided_slice %178 {offsets = [0, 0], sizes = [8, 128], strides = [1, 1]} : vector<8x384xf32> to vector<8x128xf32>
    %181 = arith.addf %179, %180 : vector<8x128xf32>
    %182 = arith.negf %181 : vector<8x128xf32>
    %183 = math.exp %182 : vector<8x128xf32>
    %cst_28 = arith.constant 1.000000e+00 : f32
    %184 = vector.broadcast %cst_28 : f32 to vector<8x128xf32>
    %185 = arith.addf %184, %183 : vector<8x128xf32>
    %186 = arith.divf %184, %185 : vector<8x128xf32>
    %187 = vector.extract_strided_slice %177 {offsets = [0, 128], sizes = [8, 128], strides = [1, 1]} : vector<8x384xf32> to vector<8x128xf32>
    %188 = vector.extract_strided_slice %178 {offsets = [0, 128], sizes = [8, 128], strides = [1, 1]} : vector<8x384xf32> to vector<8x128xf32>
    %189 = arith.addf %187, %188 : vector<8x128xf32>
    %190 = arith.negf %189 : vector<8x128xf32>
    %191 = math.exp %190 : vector<8x128xf32>
    %cst_29 = arith.constant 1.000000e+00 : f32
    %192 = vector.broadcast %cst_29 : f32 to vector<8x128xf32>
    %193 = arith.addf %192, %191 : vector<8x128xf32>
    %194 = arith.divf %192, %193 : vector<8x128xf32>
    %195 = vector.extract_strided_slice %177 {offsets = [0, 256], sizes = [8, 128], strides = [1, 1]} : vector<8x384xf32> to vector<8x128xf32>
    %196 = vector.extract_strided_slice %178 {offsets = [0, 256], sizes = [8, 128], strides = [1, 1]} : vector<8x384xf32> to vector<8x128xf32>
    %197 = arith.addf %196, %14 : vector<8x128xf32>
    %198 = arith.mulf %186, %197 : vector<8x128xf32>
    %199 = arith.addf %195, %198 : vector<8x128xf32>
    %200 = math.tanh %199 : vector<8x128xf32>
    %201 = arith.subf %176, %200 : vector<8x128xf32>
    %202 = arith.mulf %194, %201 : vector<8x128xf32>
    %203 = arith.addf %200, %202 : vector<8x128xf32>
    %c5_i32 = arith.constant 5 : i32
    %204 = vector.broadcast %c5_i32 : i32 to vector<8x1xi32>
    %205 = arith.cmpi sgt, %1, %204 : vector<8x1xi32>
    %206 = vector.shape_cast %205 : vector<8x1xi1> to vector<8x1xi1>
    %207 = vector.broadcast %206 : vector<8x1xi1> to vector<8x128xi1>
    %208 = arith.select %207, %203, %176 : vector<8x128xi1>, vector<8x128xf32>
    %209 = vector.extract_strided_slice %9 {offsets = [48, 0], sizes = [8, 384], strides = [1, 1]} : vector<64x384xf32> to vector<8x384xf32>
    %cst_30 = arith.constant dense<0.000000e+00> : vector<8x384xf32>
    %210 = tpu.matmul %208, %10, %cst_30 {dimension_numbers = #tpu.dot_dimension_numbers<[1], [0], [0], [1], [0, 0, 1, 1], [], []>} : vector<8x128xf32>, vector<128x384xf32>, vector<8x384xf32> -> vector<8x384xf32>
    %211 = vector.extract_strided_slice %209 {offsets = [0, 0], sizes = [8, 128], strides = [1, 1]} : vector<8x384xf32> to vector<8x128xf32>
    %212 = vector.extract_strided_slice %210 {offsets = [0, 0], sizes = [8, 128], strides = [1, 1]} : vector<8x384xf32> to vector<8x128xf32>
    %213 = arith.addf %211, %212 : vector<8x128xf32>
    %214 = arith.negf %213 : vector<8x128xf32>
    %215 = math.exp %214 : vector<8x128xf32>
    %cst_31 = arith.constant 1.000000e+00 : f32
    %216 = vector.broadcast %cst_31 : f32 to vector<8x128xf32>
    %217 = arith.addf %216, %215 : vector<8x128xf32>
    %218 = arith.divf %216, %217 : vector<8x128xf32>
    %219 = vector.extract_strided_slice %209 {offsets = [0, 128], sizes = [8, 128], strides = [1, 1]} : vector<8x384xf32> to vector<8x128xf32>
    %220 = vector.extract_strided_slice %210 {offsets = [0, 128], sizes = [8, 128], strides = [1, 1]} : vector<8x384xf32> to vector<8x128xf32>
    %221 = arith.addf %219, %220 : vector<8x128xf32>
    %222 = arith.negf %221 : vector<8x128xf32>
    %223 = math.exp %222 : vector<8x128xf32>
    %cst_32 = arith.constant 1.000000e+00 : f32
    %224 = vector.broadcast %cst_32 : f32 to vector<8x128xf32>
    %225 = arith.addf %224, %223 : vector<8x128xf32>
    %226 = arith.divf %224, %225 : vector<8x128xf32>
    %227 = vector.extract_strided_slice %209 {offsets = [0, 256], sizes = [8, 128], strides = [1, 1]} : vector<8x384xf32> to vector<8x128xf32>
    %228 = vector.extract_strided_slice %210 {offsets = [0, 256], sizes = [8, 128], strides = [1, 1]} : vector<8x384xf32> to vector<8x128xf32>
    %229 = arith.addf %228, %14 : vector<8x128xf32>
    %230 = arith.mulf %218, %229 : vector<8x128xf32>
    %231 = arith.addf %227, %230 : vector<8x128xf32>
    %232 = math.tanh %231 : vector<8x128xf32>
    %233 = arith.subf %208, %232 : vector<8x128xf32>
    %234 = arith.mulf %226, %233 : vector<8x128xf32>
    %235 = arith.addf %232, %234 : vector<8x128xf32>
    %c6_i32 = arith.constant 6 : i32
    %236 = vector.broadcast %c6_i32 : i32 to vector<8x1xi32>
    %237 = arith.cmpi sgt, %1, %236 : vector<8x1xi32>
    %238 = vector.shape_cast %237 : vector<8x1xi1> to vector<8x1xi1>
    %239 = vector.broadcast %238 : vector<8x1xi1> to vector<8x128xi1>
    %240 = arith.select %239, %235, %208 : vector<8x128xi1>, vector<8x128xf32>
    %241 = vector.extract_strided_slice %9 {offsets = [56, 0], sizes = [8, 384], strides = [1, 1]} : vector<64x384xf32> to vector<8x384xf32>
    %cst_33 = arith.constant dense<0.000000e+00> : vector<8x384xf32>
    %242 = tpu.matmul %240, %10, %cst_33 {dimension_numbers = #tpu.dot_dimension_numbers<[1], [0], [0], [1], [0, 0, 1, 1], [], []>} : vector<8x128xf32>, vector<128x384xf32>, vector<8x384xf32> -> vector<8x384xf32>
    %243 = vector.extract_strided_slice %241 {offsets = [0, 0], sizes = [8, 128], strides = [1, 1]} : vector<8x384xf32> to vector<8x128xf32>
    %244 = vector.extract_strided_slice %242 {offsets = [0, 0], sizes = [8, 128], strides = [1, 1]} : vector<8x384xf32> to vector<8x128xf32>
    %245 = arith.addf %243, %244 : vector<8x128xf32>
    %246 = arith.negf %245 : vector<8x128xf32>
    %247 = math.exp %246 : vector<8x128xf32>
    %cst_34 = arith.constant 1.000000e+00 : f32
    %248 = vector.broadcast %cst_34 : f32 to vector<8x128xf32>
    %249 = arith.addf %248, %247 : vector<8x128xf32>
    %250 = arith.divf %248, %249 : vector<8x128xf32>
    %251 = vector.extract_strided_slice %241 {offsets = [0, 128], sizes = [8, 128], strides = [1, 1]} : vector<8x384xf32> to vector<8x128xf32>
    %252 = vector.extract_strided_slice %242 {offsets = [0, 128], sizes = [8, 128], strides = [1, 1]} : vector<8x384xf32> to vector<8x128xf32>
    %253 = arith.addf %251, %252 : vector<8x128xf32>
    %254 = arith.negf %253 : vector<8x128xf32>
    %255 = math.exp %254 : vector<8x128xf32>
    %cst_35 = arith.constant 1.000000e+00 : f32
    %256 = vector.broadcast %cst_35 : f32 to vector<8x128xf32>
    %257 = arith.addf %256, %255 : vector<8x128xf32>
    %258 = arith.divf %256, %257 : vector<8x128xf32>
    %259 = vector.extract_strided_slice %241 {offsets = [0, 256], sizes = [8, 128], strides = [1, 1]} : vector<8x384xf32> to vector<8x128xf32>
    %260 = vector.extract_strided_slice %242 {offsets = [0, 256], sizes = [8, 128], strides = [1, 1]} : vector<8x384xf32> to vector<8x128xf32>
    %261 = arith.addf %260, %14 : vector<8x128xf32>
    %262 = arith.mulf %250, %261 : vector<8x128xf32>
    %263 = arith.addf %259, %262 : vector<8x128xf32>
    %264 = math.tanh %263 : vector<8x128xf32>
    %265 = arith.subf %240, %264 : vector<8x128xf32>
    %266 = arith.mulf %258, %265 : vector<8x128xf32>
    %267 = arith.addf %264, %266 : vector<8x128xf32>
    %c7_i32 = arith.constant 7 : i32
    %268 = vector.broadcast %c7_i32 : i32 to vector<8x1xi32>
    %269 = arith.cmpi sgt, %1, %268 : vector<8x1xi32>
    %270 = vector.shape_cast %269 : vector<8x1xi1> to vector<8x1xi1>
    %271 = vector.broadcast %270 : vector<8x1xi1> to vector<8x128xi1>
    %272 = arith.select %271, %267, %240 : vector<8x128xi1>, vector<8x128xf32>
    %cst_36 = arith.constant dense<0.000000e+00> : vector<8x128xf32>
    %273 = tpu.matmul %272, %11, %cst_36 {dimension_numbers = #tpu.dot_dimension_numbers<[1], [0], [0], [1], [0, 0, 1, 1], [], []>} : vector<8x128xf32>, vector<128x128xf32>, vector<8x128xf32> -> vector<8x128xf32>
    %274 = vector.broadcast %15 : vector<1x128xf32> to vector<8x128xf32>
    %275 = arith.addf %273, %274 : vector<8x128xf32>
    %cst_37 = arith.constant dense<0xFF800000> : vector<8xf32>
    %276 = vector.multi_reduction <maximumf>, %275, %cst_37 [1] : vector<8x128xf32> to vector<8xf32>
    %277 = vector.shape_cast %276 : vector<8xf32> to vector<8x1xf32>
    %278 = vector.broadcast %277 : vector<8x1xf32> to vector<8x128xf32>
    %279 = arith.subf %275, %278 : vector<8x128xf32>
    %280 = math.exp %279 : vector<8x128xf32>
    %cst_38 = arith.constant dense<0.000000e+00> : vector<8xf32>
    %281 = vector.multi_reduction <add>, %280, %cst_38 [1] : vector<8x128xf32> to vector<8xf32>
    %282 = vector.shape_cast %281 : vector<8xf32> to vector<8x1xf32>
    %283 = math.log %282 : vector<8x1xf32>
    %284 = arith.addf %283, %277 : vector<8x1xf32>
    %285 = tpu.iota {dimensions = array<i32: 1>} : vector<8x128xi32>
    %286 = vector.broadcast %2 : vector<8x1xi32> to vector<8x128xi32>
    %287 = arith.cmpi eq, %285, %286 : vector<8x128xi32>
    %288 = arith.extui %287 : vector<8x128xi1> to vector<8x128xi32>
    %289 = arith.sitofp %288 : vector<8x128xi32> to vector<8x128xf32>
    %290 = vector.broadcast %284 : vector<8x1xf32> to vector<8x128xf32>
    %291 = arith.subf %290, %275 : vector<8x128xf32>
    %292 = arith.mulf %289, %291 : vector<8x128xf32>
    %cst_39 = arith.constant dense<0.000000e+00> : vector<8xf32>
    %293 = vector.multi_reduction <add>, %292, %cst_39 [1] : vector<8x128xf32> to vector<8xf32>
    %294 = vector.shape_cast %293 : vector<8xf32> to vector<8x1xf32>
    %cst_40 = arith.constant dense<0.000000e+00> : vector<1xf32>
    %295 = vector.multi_reduction <add>, %294, %cst_40 [0] : vector<8x1xf32> to vector<1xf32>
    %296 = vector.shape_cast %295 : vector<1xf32> to vector<1x1xf32>
    %cst_41 = arith.constant 5.000000e-01 : f32
    %297 = vector.broadcast %cst_41 : f32 to vector<1x1xf32>
    %298 = arith.mulf %296, %297 : vector<1x1xf32>
    %c0_42 = arith.constant 0 : index
    %c0_43 = arith.constant 0 : index
    %299 = vector.load %arg4[%c0_42, %c0_43] : memref<16x128xf32, #tpu.memory_space<vmem>>, vector<8x128xf32>
    tpu.vector_store %arg4[%c0_42, %c0_43], %275 {strides = array<i32>} : memref<16x128xf32, #tpu.memory_space<vmem>>, vector<8x128xf32>,
    %300 = vector.shape_cast %298 : vector<1x1xf32> to vector<1x1xf32>
    %301 = vector.broadcast %300 : vector<1x1xf32> to vector<8x128xf32>
    %c8 = arith.constant 8 : index
    %c0_44 = arith.constant 0 : index
    %302 = vector.load %arg4[%c8, %c0_44] : memref<16x128xf32, #tpu.memory_space<vmem>>, vector<8x128xf32>
    tpu.vector_store %arg4[%c8, %c0_44], %301 {strides = array<i32>} : memref<16x128xf32, #tpu.memory_space<vmem>>, vector<8x128xf32>,
    return
  }
}

</mosaic_0001>

<bundles_post_ra>
// kernel: _gru_cls_forward_impl.1
= control target key start
LH: loop header
LB: loop body
LE: loop exit
PB: predicated region body
PF: predicated region fallthrough
CT: control target
= control target key end

     0   :  { %9 = vsyncpa [#allocation3], 0  ;;  %s2395_s0 = inlined_call_operand.vmem [shape: s32[80,1], index: 0, kind: input, shape index: {}]   ;;  %s2396_s1 = inlined_call_operand.hbm [shape: f32[128,384], index: 1, kind: input, shape index: {}]   ;;  %s2397_s2 = inlined_call_operand.hbm [shape: f32[128,512], index: 2, kind: input, shape index: {}]   ;;  %s2398_s3 = inlined_call_operand.vmem [shape: f32[8,128], index: 3, kind: input, shape index: {}]   ;;  %s2399_s4 = inlined_call_operand.vmem [shape: f32[16,128], index: 4, kind: output, shape index: {}]  }
   0x1   :  { %s17_s17 = sshll.u32 %s2396_s1, 4  ;;  %s18_s17 = int_to_ptr.hbm [resolvable:$true] %s17_s17 }
   0x2   :  { %10 = vsyncpa [#allocation5], 0  ;;  %s1566_s18 = smov [#allocation2]   ;;  %s30_s22 = sshll.u32 %s2397_s2, 4  ;;  %s31_s22 = int_to_ptr.hbm [resolvable:$true] %s30_s22 }
   0x3   :  { %s19_s19 = sshll.u32 %s1566_s18, 4  ;;  %s1567_s23 = smov 384   ;;  %s20_s19 = int_to_ptr.vmem [resolvable:$true] %s19_s19 }
   0x4   :  { %s1568_s24 = smov 24   ;;  %s1569_s25 = smov [#allocation4]  }
   0x5   :  { %25 = dma.hbm_to_vmem [thread:$0]  %s18_s17, 6144, %s20_s19, [#allocation3], %s1567_s23, %s1567_s23, %s1568_s24  }
   0x6   :  { %s32_s26 = sshll.u32 %s1569_s25, 4  ;;  %s1570_s27 = smov 512   ;;  %s33_s26 = int_to_ptr.vmem [resolvable:$true] %s32_s26 }
   0x7   :  { %s1571_s28 = smov 32  }
   0x8   :  { %38 = dma.hbm_to_vmem [thread:$0]  %s31_s22, 8192, %s33_s26, [#allocation5], %s1570_s27, %s1570_s27, %s1571_s28  }
   0x9   :  { %1562 = dma.done.wait [#allocation3], 6144  }
   0xa   :  { %1563 = vsyncadd [#allocation3], 4294961152 }
   0xb   :  { %1564 = dma.done.wait [#allocation5], 8192  }
   0xc   :  { %1565 = vsyncadd [#allocation5], 4294959104  ;;  %v1572_v0 = vmov 0   ;;  %v51_v1 = vld [vmem:[%s2395_s0 + $0x10] sm:$0xff]  ;;  %v49_v2 = vld [vmem:[%s2395_s0] sm:$0xff] }
   0xd   :  { %1377 = vset.pattern.permute.xlu1 %v1572_v0  ;;  %1376 = vset.pattern.permute.xlu0 %v1572_v0  ;;  %v53_v3 = vld [vmem:[%s2395_s0 + $0x20] sm:$0xff]  ;;  %v52_v4 = vld [vmem:[%s2395_s0 + $0x18] sm:$0xff]  ;;  %v50_v5 = vld [vmem:[%s2395_s0 + $0x8] sm:$0xff] }
   0xe   :  { %1378 = vset.pattern.permute.xlu2 %v1572_v0  ;;  %68 = vperm.xlu1 %1377, %v51_v1   ;;  %v54_v6 = vld [vmem:[%s2395_s0 + $0x28] sm:$0xff]  ;;  %v1627_v7 = vld [vmem:[#allocation4 + $0x1e0] sm:$0xff]  ;;  %v56_v9 = vld [vmem:[%s2395_s0 + $0x38] sm:$0xff] }
   0xf   :  { %62 = vperm.xlu0 %1376, %v49_v2   ;;  %74 = vperm.xlu2 %1378, %v53_v3   ;;  %v1633_v8 = vld [vmem:[%s2395_s0 + $0x40] sm:$0xff]  ;;  %v55_v10 = vld [vmem:[%s2395_s0 + $0x30] sm:$0xff]  ;;  %v154_v19 = vld [vmem:[#allocation2 + $0x168] sm:$0xff] }
  0x10   :  { %347 = vmatpush.msra.mxu3 %v1627_v7  ;;  %vm454_vm0 = vcmp.gt.s32.totalorder %v1633_v8, 0  ;;  %v1643_v12 = vld [vmem:[#allocation4 + $0x1c0] sm:$0xff]  ;;  %vm682_vm1 = vcmp.gt.s32.totalorder %v1633_v8, 2  ;;  %vm568_vm2 = vcmp.gt.s32.totalorder %v1633_v8, 1  ;;  %vm796_vm3 = vcmp.gt.s32.totalorder %v1633_v8, 3  ;;  %v155_v20 = vld [vmem:[#allocation2 + $0x170] sm:$0xff]  ;;  %157 = vmatpush.msra.mxu0 %v154_v19 }
  0x11   :  { %v455_v11 = vsel %vm454_vm0, 1, %v1572_v0  ;;  %v1645_v13 = vld [vmem:[#allocation4 + $0x1a0] sm:$0xff]  ;;  %v683_v16 = vsel %vm682_vm1, 1, %v1572_v0  ;;  %v569_v17 = vsel %vm568_vm2, 1, %v1572_v0  ;;  %v797_v21 = vsel %vm796_vm3, 1, %v1572_v0  ;;  %v156_v22 = vld [vmem:[#allocation2 + $0x178] sm:$0xff]  ;;  %198 = vmatpush.msra.mxu1 %v155_v20 }
  0x12   :  { %348 = vmatpush.msra.mxu3 %v1643_v12  ;;  %v1650_v14 = vld [vmem:[#allocation4 + $0x180] sm:$0xff]  ;;  %v151_v24 = vld [vmem:[#allocation2 + $0x150] sm:$0xff]  ;;  %v152_v25 = vld [vmem:[#allocation2 + $0x158] sm:$0xff]  ;;  %vm1024_vm4 = vcmp.gt.s32.totalorder %v1633_v8, 5  ;;  %vm910_vm5 = vcmp.gt.s32.totalorder %v1633_v8, 4  ;;  %239 = vmatpush.msra.mxu2 %v156_v22  ;;  %vm1138_vm6 = vcmp.gt.s32.totalorder %v1633_v8, 6 }
  0x13   :  { %v1654_v15 = vld [vmem:[#allocation4 + $0x160] sm:$0xff]  ;;  %v148_v28 = vld [vmem:[#allocation2 + $0x138] sm:$0xff]  ;;  %158 = vmatpush.msra.mxu0 %v151_v24  ;;  %v150_v30 = vld [vmem:[#allocation2 + $0x148] sm:$0xff]  ;;  %199 = vmatpush.msra.mxu1 %v152_v25  ;;  %v1025_v33 = vsel %vm1024_vm4, 1, %v1572_v0  ;;  %v911_v34 = vsel %vm910_vm5, 1, %v1572_v0  ;;  %v1139_v37 = vsel %vm1138_vm6, 1, %v1572_v0 }
  0x14   :  { %349 = vmatpush.msra.mxu3 %v1645_v13  ;;  %v1659_v18 = vld [vmem:[#allocation4 + $0x140] sm:$0xff]  ;;  %v146_v36 = vld [vmem:[#allocation2 + $0x128] sm:$0xff]  ;;  %v147_v38 = vld [vmem:[#allocation2 + $0x130] sm:$0xff]  ;;  %vm1252_vm7 = vcmp.gt.s32.totalorder %v1633_v8, 7 }
  0x15   :  { %v1663_v23 = vld [vmem:[#allocation4 + $0x120] sm:$0xff]  ;;  %159 = vmatpush.msra.mxu0 %v148_v28  ;;  %v142_v40 = vld [vmem:[#allocation2 + $0x108] sm:$0xff]  ;;  %v143_v41 = vld [vmem:[#allocation2 + $0x110] sm:$0xff]  ;;  %v1253_v49 = vsel %vm1252_vm7, 1, %v1572_v0 }
  0x16   :  { %71 = vperm.xlu1 %1377, %v52_v4   ;;  %350 = vmatpush.msra.mxu3 %v1650_v14  ;;  %v153_v26 = vld [vmem:[#allocation2 + $0x160] sm:$0xff]  ;;  %v144_v42 = vld [vmem:[#allocation2 + $0x118] sm:$0xff]  ;;  %v139_v44 = vld [vmem:[#allocation2 + $0xf0] sm:$0xff] }
  0x17   :  { %65 = vperm.xlu0 %1376, %v50_v5   ;;  %77 = vperm.xlu2 %1378, %v54_v6   ;;  %v1668_v27 = vld [vmem:[#allocation4 + $0x100] sm:$0xff]  ;;  %v140_v45 = vld [vmem:[#allocation2 + $0xf8] sm:$0xff]  ;;  %v138_v52 = vld [vmem:[#allocation2 + $0xe8] sm:$0xff]  ;;  %v2400_v5 = vmov 0.0  }
  0x18   :  { %351 = vmatpush.msra.mxu3 %v1654_v15  ;;  %v149_v29 = vld [vmem:[#allocation2 + $0x140] sm:$0xff]  ;;  %240 = vmatpush.msra.mxu2 %v153_v26  ;;  %v136_v48 = vld [vmem:[#allocation2 + $0xd8] sm:$0xff]  ;;  %v134_v54 = vld [vmem:[#allocation2 + $0xc8] sm:$0xff] }
  0x19   :  { %v1672_v31 = vld [vmem:[#allocation4 + $0xe0] sm:$0xff]  ;;  %200 = vmatpush.msra.mxu1 %v149_v29  ;;  %v135_v56 = vld [vmem:[#allocation2 + $0xd0] sm:$0xff]  ;;  %v130_v57 = vld [vmem:[#allocation2 + $0xa8] sm:$0xff] }
  0x1a   :  { %352 = vmatpush.msra.mxu3 %v1659_v18  ;;  %v145_v32 = vld [vmem:[#allocation2 + $0x120] sm:$0xff]  ;;  %241 = vmatpush.msra.mxu2 %v150_v30  ;;  %v131_v58 = vld [vmem:[#allocation2 + $0xb0] sm:$0xff]  ;;  %v132_v60 = vld [vmem:[#allocation2 + $0xb8] sm:$0xff] }
  0x1b   :  { %v1677_v35 = vld [vmem:[#allocation4 + $0xc0] sm:$0xff]  ;;  %160 = vmatpush.msra.mxu0 %v145_v32  ;;  %201 = vmatpush.msra.mxu1 %v146_v36  ;;  %v1701_v61 = vld [vmem:[#allocation4 + $0x1e8] sm:$0xff]  ;;  %v127_v62 = vld [vmem:[#allocation2 + $0x90] sm:$0xff] }
  0x1c   :  { %353 = vmatpush.msra.mxu3 %v1663_v23  ;;  %v1681_v39 = vld [vmem:[#allocation4 + $0xa0] sm:$0xff]  ;;  %242 = vmatpush.msra.mxu2 %v147_v38  ;;  %v128_v63 = vld [vmem:[#allocation2 + $0x98] sm:$0xff]  ;;  %v58_v0 = vld [vmem:[%s2395_s0 + $0x48] sm:$0xff] }
  0x1d   :  { %v1685_v43 = vld [vmem:[#allocation4 + $0x80] sm:$0xff]  ;;  %161 = vmatpush.msra.mxu0 %v142_v40  ;;  %202 = vmatpush.msra.mxu1 %v143_v41  ;;  %v1707_v1 = vld [vmem:[#allocation4 + $0x1c8] sm:$0xff]  ;;  %v124_v3 = vld [vmem:[#allocation2 + $0x78] sm:$0xff] }
  0x1e   :  { %83 = vperm.xlu1 %1377, %v56_v9   ;;  %354 = vmatpush.msra.mxu3 %v1668_v27  ;;  %v141_v46 = vld [vmem:[#allocation2 + $0x100] sm:$0xff]  ;;  %v1710_v4 = vld [vmem:[#allocation4 + $0x1a8] sm:$0xff]  ;;  %v119_v20 = vld [vmem:[#allocation2 + $0x50] sm:$0xff] }
  0x1f   :  { %80 = vperm.xlu0 %1376, %v55_v10   ;;  %457 = vperm.xlu2 %1378, %v455_v11   ;;  %v1688_v47 = vld [vmem:[#allocation4 + $0x60] sm:$0xff]  ;;  %v126_v8 = vld [vmem:[#allocation2 + $0x88] sm:$0xff]  ;;  %v115_v22 = vld [vmem:[#allocation2 + $0x30] sm:$0xff] }
  0x20   :  { %355 = vmatpush.msra.mxu3 %v1672_v31  ;;  %243 = vmatpush.msra.mxu2 %v144_v42  ;;  %v137_v50 = vld [vmem:[#allocation2 + $0xe0] sm:$0xff]  ;;  %v1714_v10 = vld [vmem:[#allocation4 + $0x188] sm:$0xff]  ;;  %v116_v25 = vld [vmem:[#allocation2 + $0x38] sm:$0xff] }
  0x21   :  { %162 = vmatpush.msra.mxu0 %v139_v44  ;;  %v1692_v51 = vld [vmem:[#allocation4 + $0x40] sm:$0xff]  ;;  %203 = vmatpush.msra.mxu1 %v140_v45  ;;  %v122_v11 = vld [vmem:[#allocation2 + $0x68] sm:$0xff]  ;;  %v112_v28 = vld [vmem:[#allocation2 + $0x18] sm:$0xff] }
  0x22   :  { %356 = vmatpush.msra.mxu3 %v1677_v35  ;;  %244 = vmatpush.msra.mxu2 %v141_v46  ;;  %v133_v53 = vld [vmem:[#allocation2 + $0xc0] sm:$0xff]  ;;  %v1717_v19 = vld [vmem:[#allocation4 + $0x168] sm:$0xff] }
  0x23   :  { %163 = vmatpush.msra.mxu0 %v136_v48  ;;  %v1695_v55 = vld [vmem:[#allocation4 + $0x20] sm:$0xff]  ;;  %204 = vmatpush.msra.mxu1 %v137_v50  ;;  %v1720_v24 = vld [vmem:[#allocation4 + $0x148] sm:$0xff]  ;;  %v111_v48 = vld [vmem:[#allocation2 + $0x10] sm:$0xff] }
  0x24   :  { %357 = vmatpush.msra.mxu3 %v1681_v39  ;;  %2412 = vst [vmem:[#allocation8_spill] sm:$0xff] %v1695_v55  ;;  %245 = vmatpush.msra.mxu2 %v138_v52  ;;  %v1698_v59 = vld [vmem:[#allocation4] sm:$0xff]  ;;  %v1723_v29 = vld [vmem:[#allocation4 + $0x128] sm:$0xff]  ;;  %v1758_v50 = vld [vmem:[#allocation4 + $0x1d0] sm:$0xff] }
  0x25   :  { %2413 = vst [vmem:[#allocation9_spill] sm:$0xff] %v1698_v59  ;;  %164 = vmatpush.msra.mxu0 %v133_v53  ;;  %205 = vmatpush.msra.mxu1 %v134_v54  ;;  %v129_v2 = vld [vmem:[#allocation2 + $0xa0] sm:$0xff]  ;;  %v114_v32 = vld [vmem:[#allocation2 + $0x28] sm:$0xff]  ;;  %v1772_v52 = vld [vmem:[#allocation4 + $0x1b0] sm:$0xff] }
  0x26   :  { %685 = vperm.xlu1 %1377, %v683_v16   ;;  %358 = vmatpush.msra.mxu3 %v1685_v43  ;;  %v125_v6 = vld [vmem:[#allocation2 + $0x80] sm:$0xff]  ;;  %v123_v16 = vld [vmem:[#allocation2 + $0x70] sm:$0xff]  ;;  %v1732_v36 = vld [vmem:[#allocation4 + $0xc8] sm:$0xff] }
  0x27   :  { %571 = vperm.xlu0 %1376, %v569_v17   ;;  %799 = vperm.xlu2 %1378, %v797_v21   ;;  %v121_v9 = vld [vmem:[#allocation2 + $0x60] sm:$0xff]  ;;  %v118_v17 = vld [vmem:[#allocation2 + $0x48] sm:$0xff]  ;;  %v120_v21 = vld [vmem:[#allocation2 + $0x58] sm:$0xff] }
  0x28   :  { %359 = vmatpush.msra.mxu3 %v1688_v47  ;;  %246 = vmatpush.msra.mxu2 %v135_v56  ;;  %v117_v26 = vld [vmem:[#allocation2 + $0x40] sm:$0xff]  ;;  %v1738_v38 = vld [vmem:[#allocation4 + $0x88] sm:$0xff]  ;;  %v1774_v53 = vld [vmem:[#allocation4 + $0x190] sm:$0xff] }
  0x29   :  { %165 = vmatpush.msra.mxu0 %v130_v57  ;;  %206 = vmatpush.msra.mxu1 %v131_v58  ;;  %v113_v30 = vld [vmem:[#allocation2 + $0x20] sm:$0xff]  ;;  %v1741_v40 = vld [vmem:[#allocation4 + $0x68] sm:$0xff]  ;;  %v1788_v54 = vld [vmem:[#allocation4 + $0x170] sm:$0xff]  ;;  %v59_v57 = vlaneseq }
  0x2a   :  { %360 = vmatpush.msra.mxu3 %v1692_v51  ;;  %247 = vmatpush.msra.mxu2 %v132_v60  ;;  %v1744_v41 = vld [vmem:[#allocation4 + $0x48] sm:$0xff]  ;;  %v109_v45 = vld [vmem:[#allocation2] sm:$0xff]  ;;  %v1790_v56 = vld [vmem:[#allocation4 + $0x150] sm:$0xff] }
  0x2b   :  { %166 = vmatpush.msra.mxu0 %v127_v62  ;;  %207 = vmatpush.msra.mxu1 %v128_v63  ;;  %v1747_v42 = vld [vmem:[#allocation4 + $0x28] sm:$0xff]  ;;  %v1804_v58 = vld [vmem:[#allocation4 + $0x130] sm:$0xff]  ;;  %v1811_v62 = vand.u32 127, %v59_v57 }
  0x2c   :  { %361 = vmatpush.msra.mxu3 %v1695_v55  ;;  %248 = vmatpush.msra.mxu2 %v129_v2  ;;  %2414 = vst [vmem:[#allocation10_spill] sm:$0xff] %v1747_v42  ;;  %v1750_v44 = vld [vmem:[#allocation4 + $0x8] sm:$0xff]  ;;  %v1806_v60 = vld [vmem:[#allocation4 + $0x110] sm:$0xff] }
  0x2d   :  { %167 = vmatpush.msra.mxu0 %v124_v3  ;;  %208 = vmatpush.msra.mxu1 %v125_v6  ;;  %2415 = vst [vmem:[#allocation11_spill] sm:$0xff] %v1750_v44  ;;  %v110_v46 = vld [vmem:[#allocation2 + $0x8] sm:$0xff]  ;;  %v1825_v2 = vld [vmem:[#allocation4 + $0xf0] sm:$0xff] }
  0x2e   :  { %1027 = vperm.xlu1 %1377, %v1025_v33   ;;  %362 = vmatpush.msra.mxu3 %v1698_v59  ;;  %v1726_v33 = vld [vmem:[#allocation4 + $0x108] sm:$0xff]  ;;  %2416 = vst [vmem:[#allocation12_spill] sm:$0xff] %v1811_v62  ;;  %v1827_v3 = vld [vmem:[#allocation4 + $0xd0] sm:$0xff] }
  0x2f   :  { %913 = vperm.xlu0 %1376, %v911_v34   ;;  %1141 = vperm.xlu2 %1378, %v1139_v37   ;;  %v1729_v34 = vld [vmem:[#allocation4 + $0xe8] sm:$0xff] }
  0x30   :  { %367 = vmatpush.msrb.mxu3 %v1701_v61  ;;  %249 = vmatpush.msra.mxu2 %v126_v8  ;;  %v1735_v37 = vld [vmem:[#allocation4 + $0xa8] sm:$0xff]  ;;  %v1844_v8 = vld [vmem:[#allocation4 + $0xb0] sm:$0xff] }
  0x31   :  { %363 = vmatmul.f32.vlgmr.msra.gmra.mxu3 %v2400_v5  ;;  %168 = vmatpush.msra.mxu0 %v121_v9  ;;  %v1846_v9 = vld [vmem:[#allocation4 + $0x90] sm:$0xff] }
  0x32   :  { %368 = vmatpush.msrb.mxu3 %v1707_v1  ;;  %209 = vmatpush.msra.mxu1 %v122_v11 }
  0x33   :  { %250 = vmatpush.msra.mxu2 %v123_v16  ;;  %169 = vmatpush.msra.mxu0 %v118_v17  ;;  %v1863_v16 = vld [vmem:[#allocation4 + $0x70] sm:$0xff] }
  0x34   :  { %369 = vmatpush.msrb.mxu3 %v1710_v4  ;;  %210 = vmatpush.msra.mxu1 %v119_v20  ;;  %v1865_v17 = vld [vmem:[#allocation4 + $0x50] sm:$0xff] }
  0x35   :  { %251 = vmatpush.msra.mxu2 %v120_v21  ;;  %170 = vmatpush.msra.mxu0 %v115_v22  ;;  %v1882_v21 = vld [vmem:[#allocation4 + $0x30] sm:$0xff] }
  0x36   :  { %370 = vmatpush.msrb.mxu3 %v1714_v10  ;;  %211 = vmatpush.msra.mxu1 %v116_v25  ;;  %2417 = vst [vmem:[#allocation13_spill] sm:$0xff] %v1882_v21  ;;  %v1884_v22 = vld [vmem:[#allocation4 + $0x10] sm:$0xff] }
  0x37   :  { %1255 = vperm.xlu0 %1376, %v1253_v49   ;;  %252 = vmatpush.msra.mxu2 %v117_v26  ;;  %v1756_v49 = vld [vmem:[#allocation4 + $0x1f0] sm:$0xff]  ;;  %2418 = vst [vmem:[#allocation14_spill] sm:$0xff] %v1884_v22 }
  0x38   :  { %371 = vmatpush.msrb.mxu3 %v1717_v19  ;;  %171 = vmatpush.msra.mxu0 %v112_v28 }
  0x39   :  { %212 = vmatpush.msra.mxu1 %v113_v30  ;;  %253 = vmatpush.msra.mxu2 %v114_v32 }
  0x3a   :  { %372 = vmatpush.msrb.mxu3 %v1720_v24  ;;  %172 = vmatpush.msra.mxu0 %v109_v45 }
  0x3b   :  { %213 = vmatpush.msra.mxu1 %v110_v46  ;;  %254 = vmatpush.msra.mxu2 %v111_v48 }
  0x3c   :  { %373 = vmatpush.msrb.mxu3 %v1723_v29  ;;  %387 = vmatpush.msrb.mxu0 %v1756_v49 }
  0x3d   :  { %461 = vmatpush.msrb.mxu1 %v1627_v7  ;;  %481 = vmatpush.msrb.mxu2 %v1701_v61 }
  0x3e   :  { %374 = vmatpush.msrb.mxu3 %v1726_v33  ;;  %388 = vmatpush.msrb.mxu0 %v1758_v50 }
  0x3f   :  { %1291 = vperm.xlu0 %1376, %v58_v0   ;;  %462 = vmatpush.msrb.mxu1 %v1643_v12  ;;  %v1574_v0 = vmov 1.0  }
  0x40   :  { %375 = vmatpush.msrb.mxu3 %v1729_v34  ;;  %482 = vmatpush.msrb.mxu2 %v1707_v1 }
  0x41   :  { %463 = vmatpush.msrb.mxu1 %v1645_v13  ;;  %389 = vmatpush.msrb.mxu0 %v1772_v52 }
  0x42   :  { %376 = vmatpush.msrb.mxu3 %v1732_v36  ;;  %483 = vmatpush.msrb.mxu2 %v1710_v4 }
  0x43   :  { %464 = vmatpush.msrb.mxu1 %v1650_v14  ;;  %390 = vmatpush.msrb.mxu0 %v1774_v53 }
  0x44   :  { %377 = vmatpush.msrb.mxu3 %v1735_v37  ;;  %484 = vmatpush.msrb.mxu2 %v1714_v10 }
  0x45   :  { %465 = vmatpush.msrb.mxu1 %v1654_v15  ;;  %391 = vmatpush.msrb.mxu0 %v1788_v54 }
  0x46   :  { %378 = vmatpush.msrb.mxu3 %v1738_v38  ;;  %485 = vmatpush.msrb.mxu2 %v1717_v19 }
  0x47   :  { %466 = vmatpush.msrb.mxu1 %v1659_v18  ;;  %392 = vmatpush.msrb.mxu0 %v1790_v56 }
  0x48   :  { %379 = vmatpush.msrb.mxu3 %v1741_v40  ;;  %486 = vmatpush.msrb.mxu2 %v1720_v24 }
  0x49   :  { %467 = vmatpush.msrb.mxu1 %v1663_v23  ;;  %393 = vmatpush.msrb.mxu0 %v1804_v58 }
  0x4a   :  { %380 = vmatpush.msrb.mxu3 %v1744_v41  ;;  %487 = vmatpush.msrb.mxu2 %v1723_v29 }
  0x4b   :  { %468 = vmatpush.msrb.mxu1 %v1668_v27  ;;  %394 = vmatpush.msrb.mxu0 %v1806_v60 }
  0x4c   :  { %381 = vmatpush.msrb.mxu3 %v1747_v42  ;;  %488 = vmatpush.msrb.mxu2 %v1726_v33 }
  0x4d   :  { %469 = vmatpush.msrb.mxu1 %v1672_v31  ;;  %395 = vmatpush.msrb.mxu0 %v1825_v2 }
  0x4e   :  { %382 = vmatpush.msrb.mxu3 %v1750_v44  ;;  %489 = vmatpush.msrb.mxu2 %v1729_v34 }
  0x4f   :  { %383 = vmatmul.f32.vlgmr.msrb.gmra.mxu3 %v2400_v5  ;;  %470 = vmatpush.msrb.mxu1 %v1677_v35 }
  0x50   :  { %501 = vmatpush.msra.mxu3 %v1756_v49  ;;  %490 = vmatpush.msrb.mxu2 %v1732_v36 }
  0x51   :  { %471 = vmatpush.msrb.mxu1 %v1681_v39  ;;  %396 = vmatpush.msrb.mxu0 %v1827_v3 }
  0x52   :  { %502 = vmatpush.msra.mxu3 %v1758_v50  ;;  %491 = vmatpush.msrb.mxu2 %v1735_v37 }
  0x53   :  { %472 = vmatpush.msrb.mxu1 %v1685_v43  ;;  %397 = vmatpush.msrb.mxu0 %v1844_v8 }
  0x54   :  { %503 = vmatpush.msra.mxu3 %v1772_v52  ;;  %492 = vmatpush.msrb.mxu2 %v1738_v38 }
  0x55   :  { %473 = vmatpush.msrb.mxu1 %v1688_v47  ;;  %398 = vmatpush.msrb.mxu0 %v1846_v9 }
  0x56   :  { %504 = vmatpush.msra.mxu3 %v1774_v53  ;;  %493 = vmatpush.msrb.mxu2 %v1741_v40 }
  0x57   :  { %474 = vmatpush.msrb.mxu1 %v1692_v51  ;;  %399 = vmatpush.msrb.mxu0 %v1863_v16 }
  0x58   :  { %505 = vmatpush.msra.mxu3 %v1788_v54  ;;  %494 = vmatpush.msrb.mxu2 %v1744_v41 }
  0x59   :  { %475 = vmatpush.msrb.mxu1 %v1695_v55  ;;  %400 = vmatpush.msrb.mxu0 %v1865_v17 }
  0x5a   :  { %506 = vmatpush.msra.mxu3 %v1790_v56  ;;  %495 = vmatpush.msrb.mxu2 %v1747_v42 }
  0x5b   :  { %476 = vmatpush.msrb.mxu1 %v1698_v59  ;;  %401 = vmatpush.msrb.mxu0 %v1882_v21 }
  0x5c   :  { %507 = vmatpush.msra.mxu3 %v1804_v58  ;;  %496 = vmatpush.msrb.mxu2 %v1750_v44 }
  0x5d   :  { %402 = vmatpush.msrb.mxu0 %v1884_v22 }
  0x5e   :  { %508 = vmatpush.msra.mxu3 %v1806_v60 }
  0x60   :  { %509 = vmatpush.msra.mxu3 %v1825_v2 }
  0x62   :  { %510 = vmatpush.msra.mxu3 %v1827_v3 }
  0x64   :  { %511 = vmatpush.msra.mxu3 %v1844_v8 }
  0x66   :  { %512 = vmatpush.msra.mxu3 %v1846_v9 }
  0x68   :  { %513 = vmatpush.msra.mxu3 %v1863_v16 }
  0x69   :  { %v75_v25 = vpop.permute.xlu2 %74 }
  0x6a   :  { %514 = vmatpush.msra.mxu3 %v1865_v17  ;;  %vm89_vm12 = vcmp.eq.s32.totalorder %v1811_v62, %v75_v25 }
  0x6c   :  { %515 = vmatpush.msra.mxu3 %v1882_v21 }
  0x6e   :  { %516 = vmatpush.msra.mxu3 %v1884_v22 }
  0x70   :  { %689 = vmatpush.msrb.mxu3 %v1627_v7 }
  0x71   :  { %v78_v26 = vpop.permute.xlu2 %77 }
  0x72   :  { %690 = vmatpush.msrb.mxu3 %v1643_v12  ;;  %vm90_vm13 = vcmp.eq.s32.totalorder %v1811_v62, %v78_v26 }
  0x74   :  { %691 = vmatpush.msrb.mxu3 %v1645_v13 }
  0x76   :  { %692 = vmatpush.msrb.mxu3 %v1650_v14 }
  0x78   :  { %693 = vmatpush.msrb.mxu3 %v1654_v15 }
  0x7a   :  { %694 = vmatpush.msrb.mxu3 %v1659_v18 }
  0x7c   :  { %695 = vmatpush.msrb.mxu3 %v1663_v23 }
  0x7e   :  { %696 = vmatpush.msrb.mxu3 %v1668_v27 }
  0x80   :  { %v69_v11 = vpop.permute.xlu1 %68  ;;  %697 = vmatpush.msrb.mxu3 %v1672_v31 }
  0x81   :  { %v63_v63 = vpop.permute.xlu0 %62  ;;  %vm87_vm10 = vcmp.eq.s32.totalorder %v1811_v62, %v69_v11 }
  0x82   :  { %vm85_vm8 = vcmp.eq.s32.totalorder %v1811_v62, %v63_v63  ;;  %698 = vmatpush.msrb.mxu3 %v1677_v35 }
  0x83   :  { %1323 = vmatmul.msk.f32.vlgmr.msra.gmra.mxu0 %vm85_vm8, %v1574_v0  ;;  %1331 = vmatmul.msk.f32.vlgmr.msra.gmra.mxu1 %vm85_vm8, %v1574_v0 }
  0x84   :  { %1339 = vmatmul.msk.f32.vlgmr.msra.gmra.mxu2 %vm85_vm8, %v1574_v0  ;;  %595 = vmatpush.msra.mxu1 %v1701_v61 }
  0x85   :  { %615 = vmatpush.msra.mxu2 %v1756_v49  ;;  %575 = vmatpush.msra.mxu0 %v1627_v7 }
  0x86   :  { %596 = vmatpush.msra.mxu1 %v1707_v1  ;;  %699 = vmatpush.msrb.mxu3 %v1681_v39 }
  0x87   :  { %616 = vmatpush.msra.mxu2 %v1758_v50  ;;  %576 = vmatpush.msra.mxu0 %v1643_v12 }
  0x88   :  { %597 = vmatpush.msra.mxu1 %v1710_v4  ;;  %v72_v20 = vpop.permute.xlu1 %71  ;;  %700 = vmatpush.msrb.mxu3 %v1685_v43 }
  0x89   :  { %v66_v6 = vpop.permute.xlu0 %65  ;;  %617 = vmatpush.msra.mxu2 %v1772_v52  ;;  %vm88_vm11 = vcmp.eq.s32.totalorder %v1811_v62, %v72_v20  ;;  %577 = vmatpush.msra.mxu0 %v1645_v13 }
  0x8a   :  { %vm86_vm9 = vcmp.eq.s32.totalorder %v1811_v62, %v66_v6  ;;  %598 = vmatpush.msra.mxu1 %v1714_v10  ;;  %701 = vmatpush.msrb.mxu3 %v1688_v47 }
  0x8b   :  { %1324 = vmatmul.msk.f32.gmra.mxu0 %vm86_vm9, %v1574_v0  ;;  %1332 = vmatmul.msk.f32.gmra.mxu1 %vm86_vm9, %v1574_v0 }
  0x8c   :  { %1340 = vmatmul.msk.f32.gmra.mxu2 %vm86_vm9, %v1574_v0  ;;  %599 = vmatpush.msra.mxu1 %v1717_v19 }
  0x8d   :  { %618 = vmatpush.msra.mxu2 %v1774_v53  ;;  %578 = vmatpush.msra.mxu0 %v1650_v14 }
  0x8e   :  { %600 = vmatpush.msra.mxu1 %v1720_v24  ;;  %702 = vmatpush.msrb.mxu3 %v1692_v51 }
  0x8f   :  { %619 = vmatpush.msra.mxu2 %v1788_v54  ;;  %579 = vmatpush.msra.mxu0 %v1654_v15 }
  0x90   :  { %601 = vmatpush.msra.mxu1 %v1723_v29  ;;  %v84_v30 = vpop.permute.xlu1 %83  ;;  %703 = vmatpush.msrb.mxu3 %v1695_v55 }
  0x91   :  { %620 = vmatpush.msra.mxu2 %v1790_v56  ;;  %580 = vmatpush.msra.mxu0 %v1659_v18  ;;  %v81_v28 = vpop.permute.xlu0 %80  ;;  %vm92_vm15 = vcmp.eq.s32.totalorder %v1811_v62, %v84_v30 }
  0x92   :  { %602 = vmatpush.msra.mxu1 %v1726_v33  ;;  %vm91_vm14 = vcmp.eq.s32.totalorder %v1811_v62, %v81_v28  ;;  %704 = vmatpush.msrb.mxu3 %v1698_v59 }
  0x93   :  { %1325 = vmatmul.msk.f32.gmra.mxu0 %vm87_vm10, %v1574_v0  ;;  %1333 = vmatmul.msk.f32.gmra.mxu1 %vm87_vm10, %v1574_v0 }
  0x94   :  { %1341 = vmatmul.msk.f32.gmra.mxu2 %vm87_vm10, %v1574_v0  ;;  %603 = vmatpush.msra.mxu1 %v1729_v34 }
  0x95   :  { %621 = vmatpush.msra.mxu2 %v1804_v58  ;;  %581 = vmatpush.msra.mxu0 %v1663_v23 }
  0x96   :  { %604 = vmatpush.msra.mxu1 %v1732_v36 }
  0x97   :  { %622 = vmatpush.msra.mxu2 %v1806_v60  ;;  %582 = vmatpush.msra.mxu0 %v1668_v27 }
  0x98   :  { %605 = vmatpush.msra.mxu1 %v1735_v37 }
  0x99   :  { %623 = vmatpush.msra.mxu2 %v1825_v2  ;;  %583 = vmatpush.msra.mxu0 %v1672_v31 }
  0x9a   :  { %606 = vmatpush.msra.mxu1 %v1738_v38 }
  0x9b   :  { %1326 = vmatmul.msk.f32.gmra.mxu0 %vm88_vm11, %v1574_v0  ;;  %1334 = vmatmul.msk.f32.gmra.mxu1 %vm88_vm11, %v1574_v0 }
  0x9c   :  { %1342 = vmatmul.msk.f32.gmra.mxu2 %vm88_vm11, %v1574_v0  ;;  %607 = vmatpush.msra.mxu1 %v1741_v40 }
  0x9d   :  { %624 = vmatpush.msra.mxu2 %v1827_v3  ;;  %584 = vmatpush.msra.mxu0 %v1677_v35 }
  0x9e   :  { %608 = vmatpush.msra.mxu1 %v1744_v41 }
  0x9f   :  { %625 = vmatpush.msra.mxu2 %v1844_v8  ;;  %585 = vmatpush.msra.mxu0 %v1681_v39 }
  0xa0   :  { %609 = vmatpush.msra.mxu1 %v1747_v42 }
  0xa1   :  { %626 = vmatpush.msra.mxu2 %v1846_v9  ;;  %586 = vmatpush.msra.mxu0 %v1685_v43 }
  0xa2   :  { %610 = vmatpush.msra.mxu1 %v1750_v44 }
  0xa3   :  { %1327 = vmatmul.msk.f32.gmra.mxu0 %vm89_vm12, %v1574_v0  ;;  %1335 = vmatmul.msk.f32.gmra.mxu1 %vm89_vm12, %v1574_v0 }
  0xa4   :  { %1343 = vmatmul.msk.f32.gmra.mxu2 %vm89_vm12, %v1574_v0  ;;  %587 = vmatpush.msra.mxu0 %v1688_v47 }
  0xa5   :  { %627 = vmatpush.msra.mxu2 %v1863_v16 }
  0xa6   :  { %588 = vmatpush.msra.mxu0 %v1692_v51 }
  0xa7   :  { %628 = vmatpush.msra.mxu2 %v1865_v17 }
  0xa8   :  { %589 = vmatpush.msra.mxu0 %v1695_v55 }
  0xa9   :  { %629 = vmatpush.msra.mxu2 %v1882_v21 }
  0xaa   :  { %590 = vmatpush.msra.mxu0 %v1698_v59 }
  0xab   :  { %1328 = vmatmul.msk.f32.gmra.mxu0 %vm90_vm13, %v1574_v0  ;;  %1336 = vmatmul.msk.f32.gmra.mxu1 %vm90_vm13, %v1574_v0 }
  0xac   :  { %1344 = vmatmul.msk.f32.gmra.mxu2 %vm90_vm13, %v1574_v0 }
  0xad   :  { %630 = vmatpush.msra.mxu2 %v1884_v22 }
  0xb3   :  { %1329 = vmatmul.msk.f32.gmra.mxu0 %vm91_vm14, %v1574_v0  ;;  %1337 = vmatmul.msk.f32.gmra.mxu1 %vm91_vm14, %v1574_v0 }
  0xb4   :  { %1345 = vmatmul.msk.f32.gmra.mxu2 %vm91_vm14, %v1574_v0  ;;  %v364_v46 = vpop.f32.mrf.mxu3 }
  0xbb   :  { %1330 = vmatmul.msk.f32.gmra.mxu0 %vm92_vm15, %v1574_v0  ;;  %1338 = vmatmul.msk.f32.gmra.mxu1 %vm92_vm15, %v1574_v0 }
  0xbc   :  { %1346 = vmatmul.msk.f32.gmra.mxu2 %vm92_vm15, %v1574_v0 }
  0xc3   :  { %403 = vmatmul.f32.vlgmr.msrb.gmra.mxu0 %v2400_v5 }
  0xc4   :  { %709 = vmatpush.msrb.mxu0 %v1701_v61 }
  0xc6   :  { %710 = vmatpush.msrb.mxu0 %v1707_v1 }
  0xc8   :  { %711 = vmatpush.msrb.mxu0 %v1710_v4 }
  0xca   :  { %712 = vmatpush.msrb.mxu0 %v1714_v10 }
  0xcc   :  { %713 = vmatpush.msrb.mxu0 %v1717_v19 }
  0xce   :  { %714 = vmatpush.msrb.mxu0 %v1720_v24 }
  0xd0   :  { %715 = vmatpush.msrb.mxu0 %v1723_v29 }
  0xd2   :  { %716 = vmatpush.msrb.mxu0 %v1726_v33  ;;  %v384_v11 = vpop.f32.mrf.mxu3 }
  0xd4   :  { %717 = vmatpush.msrb.mxu0 %v1729_v34 }
  0xd6   :  { %718 = vmatpush.msrb.mxu0 %v1732_v36 }
  0xd8   :  { %719 = vmatpush.msrb.mxu0 %v1735_v37 }
  0xda   :  { %720 = vmatpush.msrb.mxu0 %v1738_v38 }
  0xdc   :  { %721 = vmatpush.msrb.mxu0 %v1741_v40 }
  0xde   :  { %722 = vmatpush.msrb.mxu0 %v1744_v41 }
  0xe0   :  { %723 = vmatpush.msrb.mxu0 %v1747_v42 }
  0xe2   :  { %724 = vmatpush.msrb.mxu0 %v1750_v44 }
 0x100   :  { %v174_v32 = vpop.f32.mrf.mxu0  ;;  %v215_v6 = vpop.f32.mrf.mxu1 }
 0x101   :  { %v407_v57 = vadd.f32 %v364_v46, %v174_v32  ;;  %v427_v20 = vadd.f32 %v384_v11, %v215_v6 }
 0x103   :  { %v1347_v63 = vmul.f32 -1.442695, %v407_v57  ;;  %v1348_v28 = vmul.f32 -1.442695, %v427_v20 }
 0x105   :  { %1381 = vpow2.f32 %v1347_v63 }
 0x106   :  { %1383 = vpow2.f32 %v1348_v28  ;;  %v1983_v28 = vld [vmem:[%s2398_s3] ss:$0 sm:$0xff] }
 0x107   :  { %v256_v59 = vpop.f32.mrf.mxu2 }
 0x108   :  { %v1966_v45 = vpop.f32.mrf.mxu0 }
 0x109   :  { %2419 = vst [vmem:[#allocation15_spill] sm:$0xff] %v1966_v45 }
 0x10b   :  { %v1382_v25 = vpop.eup %1381 }
 0x10c   :  { %v411_v30 = vadd.f32 1.0, %v1382_v25  ;;  %v1384_v62 = vpop.eup %1383 }
 0x10e   :  { %1385 = vrcp.f32 %v411_v30  ;;  %v423_v25 = vand.u32 2147483648, %v411_v30  ;;  %vm417_vm1 = vweird.f32 %v411_v30 }
 0x110   :  { %v1968_v48 = vpop.f32.mrf.mxu0 }
 0x111   :  { %2420 = vst [vmem:[#allocation16_spill] sm:$0xff] %v1968_v48  ;;  %v431_v48 = vadd.f32 1.0, %v1384_v62  ;;  %v421_v62 = vand.u32 2147483647, %v411_v30 }
 0x113   :  { %1387 = vrcp.f32 %v431_v48  ;;  %vm422_vm3 = vcmp.eq.f32.partialorder %v421_v62, 8.507059e+37  ;;  %v443_v55 = vand.u32 2147483648, %v431_v48  ;;  %vm437_vm5 = vweird.f32 %v431_v48 }
 0x114   :  { %v1386_v45 = vpop.eup %1385  ;;  %v441_v21 = vand.u32 2147483647, %v431_v48 }
 0x115   :  { %v413_v32 = vmul.f32 %v1386_v45, %v411_v30  ;;  %vm418_vm0 = vweird.f32 %v1386_v45 }
 0x116   :  { %vm419_vm2 = vmor %vm417_vm1, %vm418_vm0  ;;  %vm442_vm7 = vcmp.eq.f32.partialorder %v441_v21, 8.507059e+37 }
 0x117   :  { %v414_v57 = vsub.f32 1.0, %v413_v32  ;;  %v424_v32 = vor.u32 1.1754944e-38, %v423_v25 }
 0x118   :  { %v1970_v0 = vpop.f32.mrf.mxu0 }
 0x119   :  { %2421 = vst [vmem:[#allocation17_spill] sm:$0xff] %v1970_v0  ;;  %v415_v63 = vmul.f32 %v1386_v45, %v414_v57  ;;  %v1388_v6 = vpop.eup %1387 }
 0x11a   :  { %v433_v20 = vmul.f32 %v1388_v6, %v431_v48  ;;  %vm438_vm4 = vweird.f32 %v1388_v6 }
 0x11b   :  { %v416_v11 = vadd.f32 %v1386_v45, %v415_v63  ;;  %vm439_vm6 = vmor %vm437_vm5, %vm438_vm4 }
 0x120   :  { %v1972_v26 = vpop.f32.mrf.mxu0 }
 0x121   :  { %2422 = vst [vmem:[#allocation18_spill] sm:$0xff] %v1972_v26 }
 0x128   :  { %v1974_v5 = vpop.f32.mrf.mxu0 }
 0x129   :  { %2423 = vst [vmem:[#allocation19_spill] sm:$0xff] %v1974_v5  ;;  %v420_v5 = vsel %vm419_vm2, %v1386_v45, %v416_v11  ;;  %v444_v11 = vor.u32 1.1754944e-38, %v443_v55 }
 0x130   :  { %v1976_v46 = vpop.f32.mrf.mxu0 }
 0x131   :  { %2424 = vst [vmem:[#allocation20_spill] sm:$0xff] %v1976_v46  ;;  %v434_v46 = vsub.f32 1.0, %v433_v20 }
 0x133   :  { %v435_v44 = vmul.f32 %v1388_v6, %v434_v46  ;;  %v2437_v46 = vld [vmem:[#allocation15_spill] sm:$0xff] }
 0x135   :  { %v436_v42 = vadd.f32 %v1388_v6, %v435_v44 }
 0x137   :  { %v440_v30 = vsel %vm439_vm6, %v1388_v6, %v436_v42 }
 0x138   :  { %v1978_v0 = vpop.f32.mrf.mxu0  ;;  %v445_v25 = vsel %vm442_vm7, %v444_v11, %v440_v30 }
 0x139   :  { %2425 = vst [vmem:[#allocation21_spill] sm:$0xff] %v1978_v0  ;;  %v425_v0 = vsel %vm422_vm3, %v424_v32, %v420_v5 }
 0x140   :  { %v404_v26 = vpop.f32.mrf.mxu0 }
 0x141   :  { %v447_v57 = vadd.f32 %v1983_v28, %v404_v26  ;;  %v458_v26 = vpop.permute.xlu2 %457 }
 0x142   :  { %vm459_vm8 = vcmp.eq.s32.totalorder %v458_v26, 1 }
 0x143   :  { %v448_v63 = vmul.f32 %v447_v57, %v425_v0 }
 0x145   :  { %v449_v22 = vadd.f32 %v448_v63, %v256_v59 }
 0x147   :  { %1389 = vtanh.f32 %v449_v22 }
 0x14d   :  { %v1390_v45 = vpop.eup %1389 }
 0x14e   :  { %v451_v20 = vsub.f32 0.0, %v1390_v45 }
 0x150   :  { %v452_v62 = vmul.f32 %v451_v20, %v445_v25 }
 0x152   :  { %v453_v5 = vadd.f32 %v1390_v45, %v452_v62 }
 0x154   :  { %1349 = vmatmul.msk.f32.vlgmr.msrb.gmra.mxu1 %vm459_vm8, %v453_v5  ;;  %1350 = vmatmul.msk.f32.vlgmr.msrb.gmra.mxu2 %vm459_vm8, %v453_v5  ;;  %v1986_v59 = vsel %vm459_vm8, %v453_v5, 0.0 }
 0x155   :  { %1351 = vmatmul.msk.f32.vlgmr.msra.gmra.mxu3 %vm459_vm8, %v453_v5  ;;  %729 = vmatpush.msrb.mxu1 %v1756_v49 }
 0x156   :  { %803 = vmatpush.msrb.mxu2 %v1627_v7  ;;  %823 = vmatpush.msra.mxu3 %v1701_v61  ;;  %v2426_v7 = vld [vmem:[#allocation13_spill] sm:$0xff] }
 0x157   :  { %730 = vmatpush.msrb.mxu1 %v1758_v50 }
 0x158   :  { %804 = vmatpush.msrb.mxu2 %v1643_v12  ;;  %824 = vmatpush.msra.mxu3 %v1707_v1  ;;  %v2427_v12 = vld [vmem:[#allocation8_spill] sm:$0xff] }
 0x159   :  { %731 = vmatpush.msrb.mxu1 %v1772_v52 }
 0x15a   :  { %805 = vmatpush.msrb.mxu2 %v1645_v13  ;;  %825 = vmatpush.msra.mxu3 %v1710_v4  ;;  %v2428_v13 = vld [vmem:[#allocation10_spill] sm:$0xff] }
 0x15b   :  { %732 = vmatpush.msrb.mxu1 %v1774_v53 }
 0x15c   :  { %806 = vmatpush.msrb.mxu2 %v1650_v14  ;;  %826 = vmatpush.msra.mxu3 %v1714_v10  ;;  %v2429_v14 = vld [vmem:[#allocation14_spill] sm:$0xff] }
 0x15d   :  { %733 = vmatpush.msrb.mxu1 %v1788_v54 }
 0x15e   :  { %807 = vmatpush.msrb.mxu2 %v1654_v15  ;;  %827 = vmatpush.msra.mxu3 %v1717_v19  ;;  %v2430_v15 = vld [vmem:[#allocation9_spill] sm:$0xff] }
 0x15f   :  { %734 = vmatpush.msrb.mxu1 %v1790_v56 }
 0x160   :  { %808 = vmatpush.msrb.mxu2 %v1659_v18  ;;  %828 = vmatpush.msra.mxu3 %v1720_v24  ;;  %v2431_v18 = vld [vmem:[#allocation11_spill] sm:$0xff] }
 0x161   :  { %735 = vmatpush.msrb.mxu1 %v1804_v58 }
 0x162   :  { %809 = vmatpush.msrb.mxu2 %v1663_v23  ;;  %829 = vmatpush.msra.mxu3 %v1723_v29  ;;  %v218_v23 = vpop.f32.mrf.mxu1 }
 0x163   :  { %736 = vmatpush.msrb.mxu1 %v1806_v60 }
 0x164   :  { %810 = vmatpush.msrb.mxu2 %v1668_v27  ;;  %830 = vmatpush.msra.mxu3 %v1726_v33  ;;  %v259_v27 = vpop.f32.mrf.mxu2 }
 0x165   :  { %737 = vmatpush.msrb.mxu1 %v1825_v2 }
 0x166   :  { %811 = vmatpush.msrb.mxu2 %v1672_v31  ;;  %831 = vmatpush.msra.mxu3 %v1729_v34 }
 0x167   :  { %738 = vmatpush.msrb.mxu1 %v1827_v3 }
 0x168   :  { %812 = vmatpush.msrb.mxu2 %v1677_v35  ;;  %832 = vmatpush.msra.mxu3 %v1732_v36 }
 0x169   :  { %739 = vmatpush.msrb.mxu1 %v1844_v8 }
 0x16a   :  { %813 = vmatpush.msrb.mxu2 %v1681_v39  ;;  %833 = vmatpush.msra.mxu3 %v1735_v37  ;;  %v2036_v31 = vpop.f32.mrf.mxu1 }
 0x16b   :  { %740 = vmatpush.msrb.mxu1 %v1846_v9 }
 0x16c   :  { %814 = vmatpush.msrb.mxu2 %v1685_v43  ;;  %834 = vmatpush.msra.mxu3 %v1738_v38  ;;  %v2038_v35 = vpop.f32.mrf.mxu2 }
 0x16d   :  { %741 = vmatpush.msrb.mxu1 %v1863_v16 }
 0x16e   :  { %815 = vmatpush.msrb.mxu2 %v1688_v47  ;;  %835 = vmatpush.msra.mxu3 %v1741_v40 }
 0x16f   :  { %742 = vmatpush.msrb.mxu1 %v1865_v17 }
 0x170   :  { %816 = vmatpush.msrb.mxu2 %v1692_v51  ;;  %836 = vmatpush.msra.mxu3 %v1744_v41 }
 0x171   :  { %743 = vmatpush.msrb.mxu1 %v2426_v7 }
 0x172   :  { %817 = vmatpush.msrb.mxu2 %v2427_v12  ;;  %837 = vmatpush.msra.mxu3 %v2428_v13  ;;  %v2040_v39 = vpop.f32.mrf.mxu1 }
 0x173   :  { %744 = vmatpush.msrb.mxu1 %v2429_v14 }
 0x174   :  { %818 = vmatpush.msrb.mxu2 %v2430_v15  ;;  %838 = vmatpush.msra.mxu3 %v2431_v18  ;;  %v2042_v43 = vpop.f32.mrf.mxu2 }
 0x17a   :  { %v2044_v47 = vpop.f32.mrf.mxu1 }
 0x17c   :  { %v2046_v51 = vpop.f32.mrf.mxu2 }
 0x182   :  { %v2048_v55 = vpop.f32.mrf.mxu1 }
 0x184   :  { %v2050_v42 = vpop.f32.mrf.mxu2 }
 0x185   :  { %2432 = vst [vmem:[#allocation13_spill] sm:$0xff] %v2050_v42 }
 0x18a   :  { %v2052_v44 = vpop.f32.mrf.mxu1 }
 0x18b   :  { %2433 = vst [vmem:[#allocation8_spill] sm:$0xff] %v2052_v44 }
 0x18c   :  { %v2054_v21 = vpop.f32.mrf.mxu2 }
 0x18d   :  { %2434 = vst [vmem:[#allocation10_spill] sm:$0xff] %v2054_v21 }
 0x192   :  { %v2056_v22 = vpop.f32.mrf.mxu1 }
 0x193   :  { %2435 = vst [vmem:[#allocation14_spill] sm:$0xff] %v2056_v22 }
 0x194   :  { %v2058_v48 = vpop.f32.mrf.mxu2 }
 0x195   :  { %2436 = vst [vmem:[#allocation9_spill] sm:$0xff] %v2058_v48 }
 0x1d1   :  { %v478_v0 = vpop.f32.mrf.mxu1 }
 0x1d2   :  { %v521_v6 = vadd.f32 %v478_v0, %v2437_v46 }
 0x1d4   :  { %v1352_v32 = vmul.f32 -1.442695, %v521_v6 }
 0x1d6   :  { %1391 = vpow2.f32 %v1352_v32 }
 0x1d7   :  { %v498_v57 = vpop.f32.mrf.mxu2 }
 0x1d8   :  { %v541_v63 = vadd.f32 %v498_v57, %v218_v23  ;;  %v518_v46 = vpop.f32.mrf.mxu3 }
 0x1da   :  { %v1353_v30 = vmul.f32 -1.442695, %v541_v63 }
 0x1dc   :  { %v1392_v45 = vpop.eup %1391  ;;  %1393 = vpow2.f32 %v1353_v30  ;;  %v561_v30 = vadd.f32 %v1983_v28, %v518_v46 }
 0x1dd   :  { %v525_v11 = vadd.f32 1.0, %v1392_v45 }
 0x1df   :  { %1395 = vrcp.f32 %v525_v11  ;;  %v537_v12 = vand.u32 2147483648, %v525_v11  ;;  %v535_v48 = vand.u32 2147483647, %v525_v11  ;;  %vm531_vm10 = vweird.f32 %v525_v11 }
 0x1e1   :  { %v538_v23 = vor.u32 1.1754944e-38, %v537_v12  ;;  %vm536_vm12 = vcmp.eq.f32.partialorder %v535_v48, 8.507059e+37  ;;  %v572_v12 = vpop.permute.xlu0 %571 }
 0x1e2   :  { %v1394_v20 = vpop.eup %1393  ;;  %vm573_vm1 = vcmp.eq.s32.totalorder %v572_v12, 1 }
 0x1e3   :  { %v545_v25 = vadd.f32 1.0, %v1394_v20 }
 0x1e5   :  { %v1396_v62 = vpop.eup %1395  ;;  %1397 = vrcp.f32 %v545_v25  ;;  %v557_v21 = vand.u32 2147483648, %v545_v25  ;;  %vm551_vm14 = vweird.f32 %v545_v25  ;;  %v555_v44 = vand.u32 2147483647, %v545_v25 }
 0x1e6   :  { %v527_v26 = vmul.f32 %v1396_v62, %v525_v11  ;;  %vm532_vm9 = vweird.f32 %v1396_v62 }
 0x1e7   :  { %vm533_vm11 = vmor %vm531_vm10, %vm532_vm9  ;;  %v558_v42 = vor.u32 1.1754944e-38, %v557_v21  ;;  %vm556_vm0 = vcmp.eq.f32.partialorder %v555_v44, 8.507059e+37  ;;  %v2070_v21 = vld [vmem:[#allocation4 + $0x1e0] sm:$0xff] }
 0x1e8   :  { %v528_v5 = vsub.f32 1.0, %v527_v26  ;;  %v2085_v44 = vld [vmem:[#allocation4 + $0x180] sm:$0xff] }
 0x1ea   :  { %v529_v15 = vmul.f32 %v1396_v62, %v528_v5 }
 0x1eb   :  { %v1398_v0 = vpop.eup %1397 }
 0x1ec   :  { %v547_v6 = vmul.f32 %v1398_v0, %v545_v25  ;;  %v530_v32 = vadd.f32 %v1396_v62, %v529_v15  ;;  %vm552_vm13 = vweird.f32 %v1398_v0  ;;  %v2438_v25 = vld [vmem:[#allocation16_spill] sm:$0xff] }
 0x1ed   :  { %vm553_vm15 = vmor %vm551_vm14, %vm552_vm13 }
 0x1ee   :  { %v548_v57 = vsub.f32 1.0, %v547_v6  ;;  %v534_v63 = vsel %vm533_vm11, %v1396_v62, %v530_v32 }
 0x1ef   :  { %v539_v45 = vsel %vm536_vm12, %v538_v23, %v534_v63 }
 0x1f0   :  { %v562_v20 = vmul.f32 %v561_v30, %v539_v45  ;;  %v549_v22 = vmul.f32 %v1398_v0, %v548_v57 }
 0x1f2   :  { %v563_v26 = vadd.f32 %v562_v20, %v259_v27  ;;  %v550_v5 = vadd.f32 %v1398_v0, %v549_v22 }
 0x1f4   :  { %1399 = vtanh.f32 %v563_v26  ;;  %v554_v15 = vsel %vm553_vm15, %v1398_v0, %v550_v5 }
 0x1f5   :  { %v559_v48 = vsel %vm556_vm0, %v558_v42, %v554_v15  ;;  %v2075_v42 = vld [vmem:[#allocation4 + $0x1c0] sm:$0xff] }
 0x1fa   :  { %v1400_v11 = vpop.eup %1399 }
 0x1fb   :  { %v565_v62 = vsub.f32 %v1986_v59, %v1400_v11 }
 0x1fd   :  { %v566_v46 = vmul.f32 %v565_v62, %v559_v48 }
 0x1ff   :  { %v567_v6 = vadd.f32 %v1400_v11, %v566_v46 }
 0x201   :  { %v2064_v27 = vsel %vm573_vm1, %v567_v6, %v1986_v59  ;;  %v2080_v59 = vld [vmem:[#allocation4 + $0x1a0] sm:$0xff] }
 0x202   :  { %591 = vmatmul.f32.vlgmr.msra.gmra.mxu0 %v2064_v27  ;;  %611 = vmatmul.f32.vlgmr.msra.gmra.mxu1 %v2064_v27 }
 0x203   :  { %631 = vmatmul.f32.vlgmr.msra.gmra.mxu2 %v2064_v27  ;;  %843 = vmatpush.msra.mxu0 %v1756_v49 }
 0x204   :  { %917 = vmatpush.msra.mxu1 %v2070_v21  ;;  %937 = vmatpush.msra.mxu2 %v1701_v61  ;;  %v2090_v61 = vld [vmem:[#allocation4 + $0x160] sm:$0xff] }
 0x205   :  { %844 = vmatpush.msra.mxu0 %v1758_v50 }
 0x206   :  { %918 = vmatpush.msra.mxu1 %v2075_v42  ;;  %938 = vmatpush.msra.mxu2 %v1707_v1  ;;  %v2095_v1 = vld [vmem:[#allocation4 + $0x140] sm:$0xff] }
 0x207   :  { %845 = vmatpush.msra.mxu0 %v1772_v52 }
 0x208   :  { %919 = vmatpush.msra.mxu1 %v2080_v59  ;;  %939 = vmatpush.msra.mxu2 %v1710_v4  ;;  %v2100_v4 = vld [vmem:[#allocation4 + $0x120] sm:$0xff] }
 0x209   :  { %846 = vmatpush.msra.mxu0 %v1774_v53 }
 0x20a   :  { %920 = vmatpush.msra.mxu1 %v2085_v44  ;;  %940 = vmatpush.msra.mxu2 %v1714_v10  ;;  %v2105_v10 = vld [vmem:[#allocation4 + $0x100] sm:$0xff] }
 0x20b   :  { %847 = vmatpush.msra.mxu0 %v1788_v54 }
 0x20c   :  { %921 = vmatpush.msra.mxu1 %v2090_v61  ;;  %941 = vmatpush.msra.mxu2 %v1717_v19  ;;  %v2110_v19 = vld [vmem:[#allocation4 + $0xe0] sm:$0xff] }
 0x20d   :  { %848 = vmatpush.msra.mxu0 %v1790_v56 }
 0x20e   :  { %922 = vmatpush.msra.mxu1 %v2095_v1  ;;  %942 = vmatpush.msra.mxu2 %v1720_v24  ;;  %v2115_v24 = vld [vmem:[#allocation4 + $0xc0] sm:$0xff] }
 0x20f   :  { %849 = vmatpush.msra.mxu0 %v1804_v58 }
 0x210   :  { %923 = vmatpush.msra.mxu1 %v2100_v4  ;;  %943 = vmatpush.msra.mxu2 %v1723_v29  ;;  %v2120_v29 = vld [vmem:[#allocation4 + $0xa0] sm:$0xff] }
 0x211   :  { %850 = vmatpush.msra.mxu0 %v1806_v60 }
 0x212   :  { %924 = vmatpush.msra.mxu1 %v2105_v10  ;;  %944 = vmatpush.msra.mxu2 %v1726_v33  ;;  %v2125_v33 = vld [vmem:[#allocation4 + $0x80] sm:$0xff] }
 0x213   :  { %851 = vmatpush.msra.mxu0 %v1825_v2 }
 0x214   :  { %925 = vmatpush.msra.mxu1 %v2110_v19  ;;  %945 = vmatpush.msra.mxu2 %v1729_v34  ;;  %v2130_v34 = vld [vmem:[#allocation4 + $0x60] sm:$0xff] }
 0x215   :  { %852 = vmatpush.msra.mxu0 %v1827_v3 }
 0x216   :  { %926 = vmatpush.msra.mxu1 %v2115_v24  ;;  %946 = vmatpush.msra.mxu2 %v1732_v36  ;;  %v2135_v36 = vld [vmem:[#allocation4 + $0x40] sm:$0xff] }
 0x217   :  { %853 = vmatpush.msra.mxu0 %v1844_v8 }
 0x218   :  { %927 = vmatpush.msra.mxu1 %v2120_v29  ;;  %947 = vmatpush.msra.mxu2 %v1735_v37  ;;  %v2140_v37 = vld [vmem:[#allocation4 + $0x20] sm:$0xff] }
 0x219   :  { %854 = vmatpush.msra.mxu0 %v1846_v9 }
 0x21a   :  { %928 = vmatpush.msra.mxu1 %v2125_v33  ;;  %948 = vmatpush.msra.mxu2 %v1738_v38  ;;  %v2145_v38 = vld [vmem:[#allocation4] sm:$0xff] }
 0x21b   :  { %855 = vmatpush.msra.mxu0 %v1863_v16 }
 0x21c   :  { %929 = vmatpush.msra.mxu1 %v2130_v34  ;;  %949 = vmatpush.msra.mxu2 %v1741_v40 }
 0x21d   :  { %856 = vmatpush.msra.mxu0 %v1865_v17 }
 0x21e   :  { %930 = vmatpush.msra.mxu1 %v2135_v36  ;;  %950 = vmatpush.msra.mxu2 %v1744_v41 }
 0x21f   :  { %857 = vmatpush.msra.mxu0 %v2426_v7 }
 0x220   :  { %931 = vmatpush.msra.mxu1 %v2140_v37  ;;  %951 = vmatpush.msra.mxu2 %v2428_v13 }
 0x221   :  { %858 = vmatpush.msra.mxu0 %v2429_v14 }
 0x222   :  { %932 = vmatpush.msra.mxu1 %v2145_v38  ;;  %952 = vmatpush.msra.mxu2 %v2431_v18 }
 0x27f   :  { %v592_v40 = vpop.f32.mrf.mxu0  ;;  %v612_v22 = vpop.f32.mrf.mxu1 }
 0x280   :  { %v635_v41 = vadd.f32 %v592_v40, %v2438_v25  ;;  %v655_v0 = vadd.f32 %v612_v22, %v2036_v31 }
 0x282   :  { %v1354_v32 = vmul.f32 -1.442695, %v635_v41  ;;  %v1355_v23 = vmul.f32 -1.442695, %v655_v0 }
 0x284   :  { %1401 = vpow2.f32 %v1354_v32 }
 0x285   :  { %1403 = vpow2.f32 %v1355_v23 }
 0x286   :  { %v632_v31 = vpop.f32.mrf.mxu2 }
 0x287   :  { %v675_v40 = vadd.f32 %v1983_v28, %v632_v31 }
 0x28a   :  { %v1402_v57 = vpop.eup %1401 }
 0x28b   :  { %v1404_v13 = vpop.eup %1403  ;;  %v639_v63 = vadd.f32 1.0, %v1402_v57 }
 0x28c   :  { %v659_v30 = vadd.f32 1.0, %v1404_v13 }
 0x28d   :  { %1405 = vrcp.f32 %v639_v63  ;;  %v651_v15 = vand.u32 2147483648, %v639_v63  ;;  %v649_v62 = vand.u32 2147483647, %v639_v63  ;;  %vm645_vm3 = vweird.f32 %v639_v63 }
 0x28e   :  { %1407 = vrcp.f32 %v659_v30  ;;  %v671_v23 = vand.u32 2147483648, %v659_v30  ;;  %vm665_vm7 = vweird.f32 %v659_v30  ;;  %v669_v57 = vand.u32 2147483647, %v659_v30 }
 0x28f   :  { %v652_v46 = vor.u32 1.1754944e-38, %v651_v15  ;;  %vm650_vm5 = vcmp.eq.f32.partialorder %v649_v62, 8.507059e+37 }
 0x290   :  { %vm670_vm9 = vcmp.eq.f32.partialorder %v669_v57, 8.507059e+37 }
 0x293   :  { %v1406_v45 = vpop.eup %1405 }
 0x294   :  { %v1408_v20 = vpop.eup %1407  ;;  %v641_v26 = vmul.f32 %v1406_v45, %v639_v63  ;;  %vm646_vm2 = vweird.f32 %v1406_v45 }
 0x295   :  { %v661_v5 = vmul.f32 %v1408_v20, %v659_v30  ;;  %vm647_vm4 = vmor %vm645_vm3, %vm646_vm2  ;;  %vm666_vm6 = vweird.f32 %v1408_v20  ;;  %v2162_v30 = vld [vmem:[#allocation4 + $0x1e8] sm:$0xff] }
 0x296   :  { %v642_v18 = vsub.f32 1.0, %v641_v26  ;;  %vm667_vm8 = vmor %vm665_vm7, %vm666_vm6  ;;  %v672_v26 = vor.u32 1.1754944e-38, %v671_v23 }
 0x297   :  { %v662_v12 = vsub.f32 1.0, %v661_v5  ;;  %v686_v5 = vpop.permute.xlu1 %685 }
 0x298   :  { %v643_v11 = vmul.f32 %v1406_v45, %v642_v18  ;;  %vm687_vm10 = vcmp.eq.s32.totalorder %v686_v5, 1 }
 0x299   :  { %v663_v41 = vmul.f32 %v1408_v20, %v662_v12 }
 0x29a   :  { %v644_v48 = vadd.f32 %v1406_v45, %v643_v11 }
 0x29b   :  { %v664_v32 = vadd.f32 %v1408_v20, %v663_v41 }
 0x29c   :  { %v648_v6 = vsel %vm647_vm4, %v1406_v45, %v644_v48 }
 0x29d   :  { %v653_v22 = vsel %vm650_vm5, %v652_v46, %v648_v6  ;;  %v668_v13 = vsel %vm667_vm8, %v1408_v20, %v664_v32  ;;  %v2172_v20 = vld [vmem:[#allocation4 + $0x1a8] sm:$0xff] }
 0x29e   :  { %v676_v25 = vmul.f32 %v675_v40, %v653_v22  ;;  %v673_v18 = vsel %vm670_vm9, %v672_v26, %v668_v13 }
 0x2a0   :  { %v677_v0 = vadd.f32 %v676_v25, %v2038_v35 }
 0x2a2   :  { %1409 = vtanh.f32 %v677_v0 }
 0x2a8   :  { %v1410_v63 = vpop.eup %1409 }
 0x2a9   :  { %v679_v45 = vsub.f32 %v2064_v27, %v1410_v63 }
 0x2ab   :  { %v680_v15 = vmul.f32 %v679_v45, %v673_v18 }
 0x2ad   :  { %v681_v11 = vadd.f32 %v1410_v63, %v680_v15 }
 0x2af   :  { %v2155_v35 = vsel %vm687_vm10, %v681_v11, %v2064_v27  ;;  %v2167_v27 = vld [vmem:[#allocation4 + $0x1c8] sm:$0xff] }
 0x2b0   :  { %705 = vmatmul.f32.vlgmr.msrb.gmra.mxu3 %v2155_v35  ;;  %725 = vmatmul.f32.vlgmr.msrb.gmra.mxu0 %v2155_v35 }
 0x2b1   :  { %745 = vmatmul.f32.vlgmr.msrb.gmra.mxu1 %v2155_v35  ;;  %957 = vmatpush.msrb.mxu3 %v1756_v49  ;;  %v2177_v49 = vld [vmem:[#allocation4 + $0x188] sm:$0xff] }
 0x2b2   :  { %1031 = vmatpush.msrb.mxu0 %v2070_v21  ;;  %1051 = vmatpush.msrb.mxu1 %v2162_v30 }
 0x2b3   :  { %958 = vmatpush.msrb.mxu3 %v1758_v50  ;;  %v2182_v50 = vld [vmem:[#allocation4 + $0x168] sm:$0xff] }
 0x2b4   :  { %1032 = vmatpush.msrb.mxu0 %v2075_v42  ;;  %1052 = vmatpush.msrb.mxu1 %v2167_v27 }
 0x2b5   :  { %959 = vmatpush.msrb.mxu3 %v1772_v52  ;;  %v2187_v52 = vld [vmem:[#allocation4 + $0x148] sm:$0xff] }
 0x2b6   :  { %1033 = vmatpush.msrb.mxu0 %v2080_v59  ;;  %1053 = vmatpush.msrb.mxu1 %v2172_v20 }
 0x2b7   :  { %960 = vmatpush.msrb.mxu3 %v1774_v53  ;;  %v2192_v53 = vld [vmem:[#allocation4 + $0x128] sm:$0xff] }
 0x2b8   :  { %1034 = vmatpush.msrb.mxu0 %v2085_v44  ;;  %1054 = vmatpush.msrb.mxu1 %v2177_v49 }
 0x2b9   :  { %961 = vmatpush.msrb.mxu3 %v1788_v54  ;;  %v2197_v54 = vld [vmem:[#allocation4 + $0x108] sm:$0xff] }
 0x2ba   :  { %1035 = vmatpush.msrb.mxu0 %v2090_v61  ;;  %1055 = vmatpush.msrb.mxu1 %v2182_v50 }
 0x2bb   :  { %962 = vmatpush.msrb.mxu3 %v1790_v56  ;;  %v2202_v56 = vld [vmem:[#allocation4 + $0xe8] sm:$0xff] }
 0x2bc   :  { %1036 = vmatpush.msrb.mxu0 %v2095_v1  ;;  %1056 = vmatpush.msrb.mxu1 %v2187_v52 }
 0x2bd   :  { %963 = vmatpush.msrb.mxu3 %v1804_v58  ;;  %v2207_v58 = vld [vmem:[#allocation4 + $0xc8] sm:$0xff] }
 0x2be   :  { %1037 = vmatpush.msrb.mxu0 %v2100_v4  ;;  %1057 = vmatpush.msrb.mxu1 %v2192_v53 }
 0x2bf   :  { %964 = vmatpush.msrb.mxu3 %v1806_v60  ;;  %v2212_v60 = vld [vmem:[#allocation4 + $0xa8] sm:$0xff] }
 0x2c0   :  { %1038 = vmatpush.msrb.mxu0 %v2105_v10  ;;  %1058 = vmatpush.msrb.mxu1 %v2197_v54 }
 0x2c1   :  { %965 = vmatpush.msrb.mxu3 %v1825_v2  ;;  %v2217_v2 = vld [vmem:[#allocation4 + $0x88] sm:$0xff] }
 0x2c2   :  { %1039 = vmatpush.msrb.mxu0 %v2110_v19  ;;  %1059 = vmatpush.msrb.mxu1 %v2202_v56 }
 0x2c3   :  { %966 = vmatpush.msrb.mxu3 %v1827_v3  ;;  %v2222_v3 = vld [vmem:[#allocation4 + $0x68] sm:$0xff] }
 0x2c4   :  { %1040 = vmatpush.msrb.mxu0 %v2115_v24  ;;  %1060 = vmatpush.msrb.mxu1 %v2207_v58 }
 0x2c5   :  { %967 = vmatpush.msrb.mxu3 %v1844_v8  ;;  %v2227_v8 = vld [vmem:[#allocation4 + $0x48] sm:$0xff] }
 0x2c6   :  { %1041 = vmatpush.msrb.mxu0 %v2120_v29  ;;  %1061 = vmatpush.msrb.mxu1 %v2212_v60 }
 0x2c7   :  { %968 = vmatpush.msrb.mxu3 %v1846_v9  ;;  %v2232_v9 = vld [vmem:[#allocation4 + $0x28] sm:$0xff] }
 0x2c8   :  { %1042 = vmatpush.msrb.mxu0 %v2125_v33  ;;  %1062 = vmatpush.msrb.mxu1 %v2217_v2 }
 0x2c9   :  { %969 = vmatpush.msrb.mxu3 %v1863_v16  ;;  %v2237_v16 = vld [vmem:[#allocation4 + $0x8] sm:$0xff] }
 0x2ca   :  { %1043 = vmatpush.msrb.mxu0 %v2130_v34  ;;  %1063 = vmatpush.msrb.mxu1 %v2222_v3 }
 0x2cb   :  { %970 = vmatpush.msrb.mxu3 %v1865_v17 }
 0x2cc   :  { %1044 = vmatpush.msrb.mxu0 %v2135_v36  ;;  %1064 = vmatpush.msrb.mxu1 %v2227_v8 }
 0x2cd   :  { %971 = vmatpush.msrb.mxu3 %v2426_v7  ;;  %v2439_v7 = vld [vmem:[#allocation17_spill] sm:$0xff] }
 0x2ce   :  { %1045 = vmatpush.msrb.mxu0 %v2140_v37  ;;  %1065 = vmatpush.msrb.mxu1 %v2232_v9 }
 0x2cf   :  { %972 = vmatpush.msrb.mxu3 %v2429_v14 }
 0x2d0   :  { %1046 = vmatpush.msrb.mxu0 %v2145_v38  ;;  %1066 = vmatpush.msrb.mxu1 %v2237_v16 }
 0x32d   :  { %v726_v17 = vpop.f32.mrf.mxu0 }
 0x32e   :  { %v769_v62 = vadd.f32 %v726_v17, %v2040_v39  ;;  %v746_v63 = vpop.f32.mrf.mxu1 }
 0x32f   :  { %v789_v5 = vadd.f32 %v1983_v28, %v746_v63 }
 0x330   :  { %v1357_v31 = vmul.f32 -1.442695, %v769_v62 }
 0x332   :  { %1411 = vpow2.f32 %v1357_v31 }
 0x333   :  { %v706_v48 = vpop.f32.mrf.mxu3 }
 0x334   :  { %v749_v12 = vadd.f32 %v706_v48, %v2439_v7 }
 0x336   :  { %v1356_v46 = vmul.f32 -1.442695, %v749_v12 }
 0x338   :  { %1413 = vpow2.f32 %v1356_v46  ;;  %v1412_v6 = vpop.eup %1411 }
 0x339   :  { %v773_v22 = vadd.f32 1.0, %v1412_v6 }
 0x33b   :  { %v785_v7 = vand.u32 2147483648, %v773_v22  ;;  %vm779_vm0 = vweird.f32 %v773_v22  ;;  %v783_v12 = vand.u32 2147483647, %v773_v22 }
 0x33d   :  { %vm784_vm2 = vcmp.eq.f32.partialorder %v783_v12, 8.507059e+37 }
 0x33e   :  { %v1414_v40 = vpop.eup %1413 }
 0x33f   :  { %v753_v14 = vadd.f32 1.0, %v1414_v40  ;;  %v786_v40 = vor.u32 1.1754944e-38, %v785_v7 }
 0x341   :  { %1415 = vrcp.f32 %v753_v14  ;;  %v765_v57 = vand.u32 2147483648, %v753_v14  ;;  %v763_v13 = vand.u32 2147483647, %v753_v14  ;;  %vm759_vm12 = vweird.f32 %v753_v14 }
 0x342   :  { %1417 = vrcp.f32 %v773_v22 }
 0x343   :  { %v766_v18 = vor.u32 1.1754944e-38, %v765_v57  ;;  %vm764_vm14 = vcmp.eq.f32.partialorder %v763_v13, 8.507059e+37  ;;  %v2266_v57 = vld [vmem:[#allocation4 + $0x190] sm:$0xff] }
 0x347   :  { %v1416_v25 = vpop.eup %1415 }
 0x348   :  { %v1418_v41 = vpop.eup %1417  ;;  %v755_v0 = vmul.f32 %v1416_v25, %v753_v14  ;;  %vm760_vm11 = vweird.f32 %v1416_v25 }
 0x349   :  { %v775_v23 = vmul.f32 %v1418_v41, %v773_v22  ;;  %vm761_vm13 = vmor %vm759_vm12, %vm760_vm11  ;;  %vm780_vm15 = vweird.f32 %v1418_v41  ;;  %v2251_v22 = vld [vmem:[#allocation4 + $0x1f0] sm:$0xff] }
 0x34a   :  { %v756_v32 = vsub.f32 1.0, %v755_v0  ;;  %vm781_vm1 = vmor %vm779_vm0, %vm780_vm15 }
 0x34b   :  { %v776_v45 = vsub.f32 1.0, %v775_v23 }
 0x34c   :  { %v757_v39 = vmul.f32 %v1416_v25, %v756_v32  ;;  %v800_v32 = vpop.permute.xlu2 %799 }
 0x34d   :  { %v777_v62 = vmul.f32 %v1418_v41, %v776_v45  ;;  %vm801_vm3 = vcmp.eq.s32.totalorder %v800_v32, 1 }
 0x34e   :  { %v758_v26 = vadd.f32 %v1416_v25, %v757_v39 }
 0x34f   :  { %v778_v48 = vadd.f32 %v1418_v41, %v777_v62 }
 0x350   :  { %v762_v15 = vsel %vm761_vm13, %v1416_v25, %v758_v26 }
 0x351   :  { %v767_v11 = vsel %vm764_vm14, %v766_v18, %v762_v15  ;;  %v782_v46 = vsel %vm781_vm1, %v1418_v41, %v778_v48  ;;  %v2256_v41 = vld [vmem:[#allocation4 + $0x1d0] sm:$0xff] }
 0x352   :  { %v790_v17 = vmul.f32 %v789_v5, %v767_v11  ;;  %v787_v25 = vsel %vm784_vm2, %v786_v40, %v782_v46  ;;  %v914_v46 = vpop.permute.xlu0 %913 }
 0x353   :  { %vm915_vm12 = vcmp.eq.s32.totalorder %v914_v46, 1 }
 0x354   :  { %v791_v31 = vadd.f32 %v790_v17, %v2042_v43 }
 0x356   :  { %1419 = vtanh.f32 %v791_v31 }
 0x35c   :  { %v1420_v6 = vpop.eup %1419 }
 0x35d   :  { %v793_v14 = vsub.f32 %v2155_v35, %v1420_v6 }
 0x35f   :  { %v794_v0 = vmul.f32 %v793_v14, %v787_v25  ;;  %v2441_v25 = vld [vmem:[#allocation19_spill] sm:$0xff] }
 0x361   :  { %v795_v23 = vadd.f32 %v1420_v6, %v794_v0 }
 0x363   :  { %v2246_v43 = vsel %vm801_vm3, %v795_v23, %v2155_v35  ;;  %v2261_v35 = vld [vmem:[#allocation4 + $0x1b0] sm:$0xff] }
 0x364   :  { %819 = vmatmul.f32.vlgmr.msrb.gmra.mxu2 %v2246_v43  ;;  %839 = vmatmul.f32.vlgmr.msra.gmra.mxu3 %v2246_v43 }
 0x365   :  { %859 = vmatmul.f32.vlgmr.msra.gmra.mxu0 %v2246_v43  ;;  %1071 = vmatpush.msrb.mxu2 %v2251_v22 }
 0x366   :  { %1145 = vmatpush.msra.mxu3 %v2070_v21  ;;  %1165 = vmatpush.msra.mxu0 %v2162_v30  ;;  %v2271_v21 = vld [vmem:[#allocation4 + $0x170] sm:$0xff] }
 0x367   :  { %1072 = vmatpush.msrb.mxu2 %v2256_v41  ;;  %v2440_v30 = vld [vmem:[#allocation18_spill] sm:$0xff] }
 0x368   :  { %1146 = vmatpush.msra.mxu3 %v2075_v42  ;;  %1166 = vmatpush.msra.mxu0 %v2167_v27  ;;  %v2276_v42 = vld [vmem:[#allocation4 + $0x150] sm:$0xff] }
 0x369   :  { %1073 = vmatpush.msrb.mxu2 %v2261_v35 }
 0x36a   :  { %1147 = vmatpush.msra.mxu3 %v2080_v59  ;;  %1167 = vmatpush.msra.mxu0 %v2172_v20  ;;  %v2281_v59 = vld [vmem:[#allocation4 + $0x130] sm:$0xff] }
 0x36b   :  { %1074 = vmatpush.msrb.mxu2 %v2266_v57 }
 0x36c   :  { %1148 = vmatpush.msra.mxu3 %v2085_v44  ;;  %1168 = vmatpush.msra.mxu0 %v2177_v49  ;;  %v2286_v44 = vld [vmem:[#allocation4 + $0x110] sm:$0xff] }
 0x36d   :  { %1075 = vmatpush.msrb.mxu2 %v2271_v21 }
 0x36e   :  { %1149 = vmatpush.msra.mxu3 %v2090_v61  ;;  %1169 = vmatpush.msra.mxu0 %v2182_v50  ;;  %v2291_v61 = vld [vmem:[#allocation4 + $0xf0] sm:$0xff] }
 0x36f   :  { %1076 = vmatpush.msrb.mxu2 %v2276_v42 }
 0x370   :  { %1150 = vmatpush.msra.mxu3 %v2095_v1  ;;  %1170 = vmatpush.msra.mxu0 %v2187_v52  ;;  %v2296_v1 = vld [vmem:[#allocation4 + $0xd0] sm:$0xff] }
 0x371   :  { %1077 = vmatpush.msrb.mxu2 %v2281_v59 }
 0x372   :  { %1151 = vmatpush.msra.mxu3 %v2100_v4  ;;  %1171 = vmatpush.msra.mxu0 %v2192_v53  ;;  %v2301_v4 = vld [vmem:[#allocation4 + $0xb0] sm:$0xff] }
 0x373   :  { %1078 = vmatpush.msrb.mxu2 %v2286_v44 }
 0x374   :  { %1152 = vmatpush.msra.mxu3 %v2105_v10  ;;  %1172 = vmatpush.msra.mxu0 %v2197_v54  ;;  %v2306_v10 = vld [vmem:[#allocation4 + $0x90] sm:$0xff] }
 0x375   :  { %1079 = vmatpush.msrb.mxu2 %v2291_v61 }
 0x376   :  { %1153 = vmatpush.msra.mxu3 %v2110_v19  ;;  %1173 = vmatpush.msra.mxu0 %v2202_v56  ;;  %v2311_v19 = vld [vmem:[#allocation4 + $0x70] sm:$0xff] }
 0x377   :  { %1080 = vmatpush.msrb.mxu2 %v2296_v1 }
 0x378   :  { %1154 = vmatpush.msra.mxu3 %v2115_v24  ;;  %1174 = vmatpush.msra.mxu0 %v2207_v58  ;;  %v2316_v24 = vld [vmem:[#allocation4 + $0x50] sm:$0xff] }
 0x379   :  { %1081 = vmatpush.msrb.mxu2 %v2301_v4 }
 0x37a   :  { %1155 = vmatpush.msra.mxu3 %v2120_v29  ;;  %1175 = vmatpush.msra.mxu0 %v2212_v60  ;;  %v2321_v29 = vld [vmem:[#allocation4 + $0x30] sm:$0xff] }
 0x37b   :  { %1082 = vmatpush.msrb.mxu2 %v2306_v10 }
 0x37c   :  { %1156 = vmatpush.msra.mxu3 %v2125_v33  ;;  %1176 = vmatpush.msra.mxu0 %v2217_v2  ;;  %v2326_v33 = vld [vmem:[#allocation4 + $0x10] sm:$0xff] }
 0x37d   :  { %1083 = vmatpush.msrb.mxu2 %v2311_v19 }
 0x37e   :  { %1157 = vmatpush.msra.mxu3 %v2130_v34  ;;  %1177 = vmatpush.msra.mxu0 %v2222_v3 }
 0x37f   :  { %1084 = vmatpush.msrb.mxu2 %v2316_v24 }
 0x380   :  { %1158 = vmatpush.msra.mxu3 %v2135_v36  ;;  %1178 = vmatpush.msra.mxu0 %v2227_v8 }
 0x381   :  { %1085 = vmatpush.msrb.mxu2 %v2321_v29 }
 0x382   :  { %1159 = vmatpush.msra.mxu3 %v2140_v37  ;;  %1179 = vmatpush.msra.mxu0 %v2232_v9 }
 0x383   :  { %1086 = vmatpush.msrb.mxu2 %v2326_v33 }
 0x384   :  { %1160 = vmatpush.msra.mxu3 %v2145_v38  ;;  %1180 = vmatpush.msra.mxu0 %v2237_v16 }
 0x3e7   :  { %v820_v34 = vpop.f32.mrf.mxu2  ;;  %v840_v36 = vpop.f32.mrf.mxu3 }
 0x3e8   :  { %v863_v27 = vadd.f32 %v820_v34, %v2440_v30  ;;  %v883_v20 = vadd.f32 %v840_v36, %v2044_v47  ;;  %v860_v47 = vpop.f32.mrf.mxu0  ;;  %v2363_v36 = vld [vmem:[%s2398_s3] ss:$0 sm:$0xff] }
 0x3e9   :  { %v903_v63 = vadd.f32 %v1983_v28, %v860_v47 }
 0x3ea   :  { %v1358_v49 = vmul.f32 -1.442695, %v863_v27  ;;  %v1359_v50 = vmul.f32 -1.442695, %v883_v20 }
 0x3ec   :  { %1421 = vpow2.f32 %v1358_v49 }
 0x3ed   :  { %1423 = vpow2.f32 %v1359_v50  ;;  %v2442_v50 = vld [vmem:[#allocation13_spill] sm:$0xff] }
 0x3f2   :  { %v1422_v37 = vpop.eup %1421 }
 0x3f3   :  { %v1424_v52 = vpop.eup %1423  ;;  %v867_v53 = vadd.f32 1.0, %v1422_v37 }
 0x3f4   :  { %v887_v54 = vadd.f32 1.0, %v1424_v52 }
 0x3f5   :  { %1425 = vrcp.f32 %v867_v53  ;;  %v879_v2 = vand.u32 2147483648, %v867_v53  ;;  %v877_v9 = vand.u32 2147483647, %v867_v53  ;;  %vm873_vm5 = vweird.f32 %v867_v53 }
 0x3f6   :  { %1427 = vrcp.f32 %v887_v54  ;;  %v899_v17 = vand.u32 2147483648, %v887_v54  ;;  %vm893_vm9 = vweird.f32 %v887_v54  ;;  %v897_v62 = vand.u32 2147483647, %v887_v54 }
 0x3f7   :  { %v880_v39 = vor.u32 1.1754944e-38, %v879_v2  ;;  %vm878_vm7 = vcmp.eq.f32.partialorder %v877_v9, 8.507059e+37 }
 0x3f8   :  { %v900_v7 = vor.u32 1.1754944e-38, %v899_v17  ;;  %vm898_vm11 = vcmp.eq.f32.partialorder %v897_v62, 8.507059e+37 }
 0x3fb   :  { %v1426_v56 = vpop.eup %1425 }
 0x3fc   :  { %v1428_v38 = vpop.eup %1427  ;;  %v869_v58 = vmul.f32 %v1426_v56, %v867_v53  ;;  %vm874_vm4 = vweird.f32 %v1426_v56 }
 0x3fd   :  { %v889_v3 = vmul.f32 %v1428_v38, %v887_v54  ;;  %vm875_vm6 = vmor %vm873_vm5, %vm874_vm4  ;;  %vm894_vm8 = vweird.f32 %v1428_v38 }
 0x3fe   :  { %v870_v60 = vsub.f32 1.0, %v869_v58  ;;  %vm895_vm10 = vmor %vm893_vm9, %vm894_vm8 }
 0x3ff   :  { %v890_v13 = vsub.f32 1.0, %v889_v3  ;;  %v1028_v3 = vpop.permute.xlu1 %1027 }
 0x400   :  { %v871_v8 = vmul.f32 %v1426_v56, %v870_v60  ;;  %vm1029_vm5 = vcmp.eq.s32.totalorder %v1028_v3, 1  ;;  %v334_v3 = vld [vmem:[#allocation4 + $0xd8] sm:$0xff] }
 0x401   :  { %v891_v5 = vmul.f32 %v1428_v38, %v890_v13  ;;  %v2443_v13 = vld [vmem:[#allocation20_spill] sm:$0xff] }
 0x402   :  { %v872_v16 = vadd.f32 %v1426_v56, %v871_v8 }
 0x403   :  { %v892_v11 = vadd.f32 %v1428_v38, %v891_v5 }
 0x404   :  { %v876_v26 = vsel %vm875_vm6, %v1426_v56, %v872_v16 }
 0x405   :  { %v881_v45 = vsel %vm878_vm7, %v880_v39, %v876_v26  ;;  %v896_v31 = vsel %vm895_vm10, %v1428_v38, %v892_v11  ;;  %v2444_v26 = vld [vmem:[#allocation8_spill] sm:$0xff] }
 0x406   :  { %v904_v18 = vmul.f32 %v903_v63, %v881_v45  ;;  %v901_v12 = vsel %vm898_vm11, %v900_v7, %v896_v31 }
 0x408   :  { %v905_v15 = vadd.f32 %v904_v18, %v2046_v51 }
 0x40a   :  { %1429 = vtanh.f32 %v905_v15 }
 0x410   :  { %v1430_v48 = vpop.eup %1429 }
 0x411   :  { %v907_v28 = vsub.f32 %v2246_v43, %v1430_v48 }
 0x413   :  { %v908_v6 = vmul.f32 %v907_v28, %v901_v12 }
 0x415   :  { %v909_v40 = vadd.f32 %v1430_v48, %v908_v6 }
 0x417   :  { %v2337_v51 = vsel %vm915_vm12, %v909_v40, %v2246_v43 }
 0x418   :  { %933 = vmatmul.f32.vlgmr.msra.gmra.mxu1 %v2337_v51  ;;  %953 = vmatmul.f32.vlgmr.msra.gmra.mxu2 %v2337_v51 }
 0x419   :  { %973 = vmatmul.f32.vlgmr.msrb.gmra.mxu3 %v2337_v51  ;;  %1185 = vmatpush.msra.mxu1 %v2251_v22 }
 0x41b   :  { %1186 = vmatpush.msra.mxu1 %v2256_v41 }
 0x41d   :  { %1187 = vmatpush.msra.mxu1 %v2261_v35 }
 0x41f   :  { %1188 = vmatpush.msra.mxu1 %v2266_v57 }
 0x421   :  { %1189 = vmatpush.msra.mxu1 %v2271_v21 }
 0x423   :  { %1190 = vmatpush.msra.mxu1 %v2276_v42 }
 0x425   :  { %1191 = vmatpush.msra.mxu1 %v2281_v59 }
 0x427   :  { %1192 = vmatpush.msra.mxu1 %v2286_v44 }
 0x429   :  { %1193 = vmatpush.msra.mxu1 %v2291_v61 }
 0x42b   :  { %1194 = vmatpush.msra.mxu1 %v2296_v1 }
 0x42d   :  { %1195 = vmatpush.msra.mxu1 %v2301_v4 }
 0x42f   :  { %1196 = vmatpush.msra.mxu1 %v2306_v10 }
 0x431   :  { %1197 = vmatpush.msra.mxu1 %v2311_v19 }
 0x433   :  { %1198 = vmatpush.msra.mxu1 %v2316_v24 }
 0x435   :  { %1199 = vmatpush.msra.mxu1 %v2321_v29 }
 0x437   :  { %1200 = vmatpush.msra.mxu1 %v2326_v33 }
 0x495   :  { %v934_v14 = vpop.f32.mrf.mxu1 }
 0x496   :  { %v977_v0 = vadd.f32 %v934_v14, %v2441_v25 }
 0x498   :  { %v1360_v32 = vmul.f32 -1.442695, %v977_v0 }
 0x49a   :  { %1431 = vpow2.f32 %v1360_v32 }
 0x49b   :  { %v954_v23 = vpop.f32.mrf.mxu2 }
 0x49c   :  { %v997_v43 = vadd.f32 %v954_v23, %v2048_v55  ;;  %v974_v19 = vpop.f32.mrf.mxu3 }
 0x49d   :  { %v1017_v30 = vadd.f32 %v2363_v36, %v974_v19  ;;  %v1142_v19 = vpop.permute.xlu2 %1141 }
 0x49e   :  { %v1361_v22 = vmul.f32 -1.442695, %v997_v43 }
 0x4a0   :  { %v1432_v41 = vpop.eup %1431  ;;  %1433 = vpow2.f32 %v1361_v22 }
 0x4a1   :  { %v981_v35 = vadd.f32 1.0, %v1432_v41 }
 0x4a3   :  { %1435 = vrcp.f32 %v981_v35  ;;  %v993_v61 = vand.u32 2147483648, %v981_v35  ;;  %v991_v4 = vand.u32 2147483647, %v981_v35  ;;  %vm987_vm14 = vweird.f32 %v981_v35 }
 0x4a5   :  { %v994_v55 = vor.u32 1.1754944e-38, %v993_v61  ;;  %vm992_vm0 = vcmp.eq.f32.partialorder %v991_v4, 8.507059e+37 }
 0x4a6   :  { %v1434_v57 = vpop.eup %1433 }
 0x4a7   :  { %v1001_v21 = vadd.f32 1.0, %v1434_v57 }
 0x4a9   :  { %v1436_v42 = vpop.eup %1435  ;;  %1437 = vrcp.f32 %v1001_v21  ;;  %v1013_v53 = vand.u32 2147483648, %v1001_v21  ;;  %vm1007_vm2 = vweird.f32 %v1001_v21  ;;  %v1011_v54 = vand.u32 2147483647, %v1001_v21 }
 0x4aa   :  { %v983_v59 = vmul.f32 %v1436_v42, %v981_v35  ;;  %vm988_vm13 = vweird.f32 %v1436_v42  ;;  %v2445_v35 = vld [vmem:[#allocation10_spill] sm:$0xff] }
 0x4ab   :  { %vm989_vm15 = vmor %vm987_vm14, %vm988_vm13  ;;  %v1014_v58 = vor.u32 1.1754944e-38, %v1013_v53  ;;  %vm1012_vm4 = vcmp.eq.f32.partialorder %v1011_v54, 8.507059e+37  ;;  %vm1143_vm14 = vcmp.eq.s32.totalorder %v1142_v19, 1  ;;  %v337_v53 = vld [vmem:[#allocation4 + $0x138] sm:$0xff] }
 0x4ac   :  { %v984_v44 = vsub.f32 1.0, %v983_v59 }
 0x4ae   :  { %v985_v1 = vmul.f32 %v1436_v42, %v984_v44 }
 0x4af   :  { %v1438_v10 = vpop.eup %1437 }
 0x4b0   :  { %v1003_v24 = vmul.f32 %v1438_v10, %v1001_v21  ;;  %v986_v29 = vadd.f32 %v1436_v42, %v985_v1  ;;  %vm1008_vm1 = vweird.f32 %v1438_v10 }
 0x4b1   :  { %vm1009_vm3 = vmor %vm1007_vm2, %vm1008_vm1 }
 0x4b2   :  { %v1004_v33 = vsub.f32 1.0, %v1003_v24  ;;  %v990_v34 = vsel %vm989_vm15, %v1436_v42, %v986_v29 }
 0x4b3   :  { %v995_v27 = vsel %vm992_vm0, %v994_v55, %v990_v34  ;;  %v342_v34 = vld [vmem:[#allocation4 + $0x1d8] sm:$0xff] }
 0x4b4   :  { %v1018_v20 = vmul.f32 %v1017_v30, %v995_v27  ;;  %v1005_v49 = vmul.f32 %v1438_v10, %v1004_v33  ;;  %v343_v33 = vld [vmem:[#allocation4 + $0x1f8] sm:$0xff] }
 0x4b5   :  { %1260 = vmatpush.msra.mxu2 %v343_v33  ;;  %v341_v30 = vld [vmem:[#allocation4 + $0x1b8] sm:$0xff] }
 0x4b6   :  { %v1019_v37 = vadd.f32 %v1018_v20, %v2442_v50  ;;  %v1006_v52 = vadd.f32 %v1438_v10, %v1005_v49  ;;  %v340_v27 = vld [vmem:[#allocation4 + $0x198] sm:$0xff]  ;;  %v2446_v50 = vld [vmem:[#allocation14_spill] sm:$0xff] }
 0x4b7   :  { %1261 = vmatpush.msra.mxu2 %v342_v34  ;;  %v339_v49 = vld [vmem:[#allocation4 + $0x178] sm:$0xff] }
 0x4b8   :  { %1439 = vtanh.f32 %v1019_v37  ;;  %v1010_v56 = vsel %vm1009_vm3, %v1438_v10, %v1006_v52  ;;  %v338_v52 = vld [vmem:[#allocation4 + $0x158] sm:$0xff] }
 0x4b9   :  { %v1015_v2 = vsel %vm1012_vm4, %v1014_v58, %v1010_v56  ;;  %1262 = vmatpush.msra.mxu2 %v341_v30  ;;  %v336_v56 = vld [vmem:[#allocation4 + $0x118] sm:$0xff] }
 0x4ba   :  { %v335_v58 = vld [vmem:[#allocation4 + $0xf8] sm:$0xff] }
 0x4bb   :  { %1263 = vmatpush.msra.mxu2 %v340_v27 }
 0x4bd   :  { %1264 = vmatpush.msra.mxu2 %v339_v49 }
 0x4be   :  { %v1440_v38 = vpop.eup %1439 }
 0x4bf   :  { %v1021_v60 = vsub.f32 %v2337_v51, %v1440_v38  ;;  %1265 = vmatpush.msra.mxu2 %v338_v52 }
 0x4c1   :  { %v1022_v8 = vmul.f32 %v1021_v60, %v1015_v2  ;;  %1266 = vmatpush.msra.mxu2 %v337_v53  ;;  %v2447_v60 = vld [vmem:[#allocation21_spill] sm:$0xff]  ;;  %v2450_v53 = vmov 0.0  }
 0x4c3   :  { %v1023_v9 = vadd.f32 %v1440_v38, %v1022_v8  ;;  %1267 = vmatpush.msra.mxu2 %v336_v56 }
 0x4c5   :  { %v1030_v47 = vsel %vm1029_vm5, %v1023_v9, %v2337_v51  ;;  %1268 = vmatpush.msra.mxu2 %v335_v58  ;;  %v333_v9 = vld [vmem:[#allocation4 + $0xb8] sm:$0xff] }
 0x4c6   :  { %1047 = vmatmul.f32.vlgmr.msrb.gmra.mxu0 %v1030_v47  ;;  %1067 = vmatmul.f32.vlgmr.msrb.gmra.mxu1 %v1030_v47 }
 0x4c7   :  { %1087 = vmatmul.f32.vlgmr.msrb.gmra.mxu2 %v1030_v47 }
 0x4c8   :  { %1269 = vmatpush.msra.mxu2 %v334_v3 }
 0x4ca   :  { %1270 = vmatpush.msra.mxu2 %v333_v9 }
 0x543   :  { %v1048_v16 = vpop.f32.mrf.mxu0  ;;  %v1068_v39 = vpop.f32.mrf.mxu1 }
 0x544   :  { %v1091_v63 = vadd.f32 %v1048_v16, %v2443_v13  ;;  %v1111_v45 = vadd.f32 %v1068_v39, %v2444_v26  ;;  %v331_v39 = vld [vmem:[#allocation4 + $0x78] sm:$0xff] }
 0x545   :  { %v330_v13 = vld [vmem:[#allocation4 + $0x58] sm:$0xff] }
 0x546   :  { %v1362_v18 = vmul.f32 -1.442695, %v1091_v63  ;;  %v1363_v5 = vmul.f32 -1.442695, %v1111_v45 }
 0x548   :  { %1441 = vpow2.f32 %v1362_v18  ;;  %v329_v18 = vld [vmem:[#allocation4 + $0x38] sm:$0xff] }
 0x549   :  { %1443 = vpow2.f32 %v1363_v5  ;;  %v328_v5 = vld [vmem:[#allocation4 + $0x18] sm:$0xff] }
 0x54a   :  { %v1088_v51 = vpop.f32.mrf.mxu2 }
 0x54b   :  { %v1131_v23 = vadd.f32 %v2363_v36, %v1088_v51 }
 0x54e   :  { %v1442_v15 = vpop.eup %1441 }
 0x54f   :  { %v1444_v11 = vpop.eup %1443  ;;  %v1095_v17 = vadd.f32 1.0, %v1442_v15 }
 0x550   :  { %v1115_v62 = vadd.f32 1.0, %v1444_v11 }
 0x551   :  { %1445 = vrcp.f32 %v1095_v17  ;;  %v1107_v46 = vand.u32 2147483648, %v1095_v17  ;;  %v1105_v40 = vand.u32 2147483647, %v1095_v17  ;;  %vm1101_vm7 = vweird.f32 %v1095_v17 }
 0x552   :  { %1447 = vrcp.f32 %v1115_v62  ;;  %v1127_v42 = vand.u32 2147483648, %v1115_v62  ;;  %vm1121_vm11 = vweird.f32 %v1115_v62  ;;  %v1125_v59 = vand.u32 2147483647, %v1115_v62 }
 0x553   :  { %v1108_v0 = vor.u32 1.1754944e-38, %v1107_v46  ;;  %vm1106_vm9 = vcmp.eq.f32.partialorder %v1105_v40, 8.507059e+37 }
 0x554   :  { %v1128_v1 = vor.u32 1.1754944e-38, %v1127_v42  ;;  %vm1126_vm13 = vcmp.eq.f32.partialorder %v1125_v59, 8.507059e+37 }
 0x557   :  { %v1446_v31 = vpop.eup %1445 }
 0x558   :  { %v1448_v48 = vpop.eup %1447  ;;  %v1097_v7 = vmul.f32 %v1446_v31, %v1095_v17  ;;  %vm1102_vm6 = vweird.f32 %v1446_v31 }
 0x559   :  { %v1117_v12 = vmul.f32 %v1448_v48, %v1115_v62  ;;  %vm1103_vm8 = vmor %vm1101_vm7, %vm1102_vm6  ;;  %vm1122_vm10 = vweird.f32 %v1448_v48 }
 0x55a   :  { %v1098_v28 = vsub.f32 1.0, %v1097_v7  ;;  %vm1123_vm12 = vmor %vm1121_vm11, %vm1122_vm10 }
 0x55b   :  { %v1118_v25 = vsub.f32 1.0, %v1117_v12 }
 0x55c   :  { %v1099_v6 = vmul.f32 %v1446_v31, %v1098_v28 }
 0x55d   :  { %v1119_v41 = vmul.f32 %v1448_v48, %v1118_v25 }
 0x55e   :  { %v1100_v14 = vadd.f32 %v1446_v31, %v1099_v6 }
 0x55f   :  { %v1120_v21 = vadd.f32 %v1448_v48, %v1119_v41 }
 0x560   :  { %v1104_v32 = vsel %vm1103_vm8, %v1446_v31, %v1100_v14 }
 0x561   :  { %v1109_v43 = vsel %vm1106_vm9, %v1108_v0, %v1104_v32  ;;  %v1124_v44 = vsel %vm1123_vm12, %v1448_v48, %v1120_v21 }
 0x562   :  { %v1132_v22 = vmul.f32 %v1131_v23, %v1109_v43  ;;  %v1129_v10 = vsel %vm1126_vm13, %v1128_v1, %v1124_v44  ;;  %v2448_v23 = vld [vmem:[#allocation9_spill] sm:$0xff]  ;;  %v1256_v44 = vpop.permute.xlu0 %1255 }
 0x563   :  { %vm1257_vm7 = vcmp.eq.s32.totalorder %v1256_v44, 1 }
 0x564   :  { %v1133_v57 = vadd.f32 %v1132_v22, %v2445_v35 }
 0x566   :  { %1449 = vtanh.f32 %v1133_v57 }
 0x56c   :  { %v1450_v61 = vpop.eup %1449 }
 0x56d   :  { %v1135_v4 = vsub.f32 %v1030_v47, %v1450_v61 }
 0x56f   :  { %v1136_v24 = vmul.f32 %v1135_v4, %v1129_v10  ;;  %v1380_v10 = vld [vmem:[%s2398_s3 + $0x1] ss:$0 sm:$0xff] }
 0x571   :  { %v1137_v29 = vadd.f32 %v1450_v61, %v1136_v24 }
 0x573   :  { %v2373_v55 = vsel %vm1143_vm14, %v1137_v29, %v1030_v47  ;;  %v332_v47 = vld [vmem:[#allocation4 + $0x98] sm:$0xff] }
 0x574   :  { %1161 = vmatmul.f32.vlgmr.msra.gmra.mxu3 %v2373_v55  ;;  %1181 = vmatmul.f32.vlgmr.msra.gmra.mxu0 %v2373_v55 }
 0x575   :  { %1201 = vmatmul.f32.vlgmr.msra.gmra.mxu1 %v2373_v55  ;;  %1271 = vmatpush.msra.mxu2 %v332_v47 }
 0x577   :  { %1272 = vmatpush.msra.mxu2 %v331_v39 }
 0x579   :  { %1273 = vmatpush.msra.mxu2 %v330_v13 }
 0x57b   :  { %1274 = vmatpush.msra.mxu2 %v329_v18 }
 0x57d   :  { %1275 = vmatpush.msra.mxu2 %v328_v5 }
 0x5f1   :  { %v1182_v20 = vpop.f32.mrf.mxu0 }
 0x5f2   :  { %v1225_v37 = vadd.f32 %v1182_v20, %v2446_v50  ;;  %v1202_v12 = vpop.f32.mrf.mxu1  ;;  %v1292_v20 = vpop.permute.xlu0 %1291  ;;  %v2449_v50 = vld [vmem:[#allocation12_spill] sm:$0xff] }
 0x5f3   :  { %v1245_v51 = vadd.f32 %v2363_v36, %v1202_v12  ;;  %vm1293_vm8 = vcmp.eq.s32.totalorder %v2449_v50, %v1292_v20 }
 0x5f4   :  { %v1365_v54 = vmul.f32 -1.442695, %v1225_v37 }
 0x5f6   :  { %1451 = vpow2.f32 %v1365_v54  ;;  %v1366_v54 = vsel %vm1293_vm8, 1.0, %v2450_v53 }
 0x5f7   :  { %v1162_v38 = vpop.f32.mrf.mxu3 }
 0x5f8   :  { %v1205_v2 = vadd.f32 %v1162_v38, %v2447_v60 }
 0x5fa   :  { %v1364_v8 = vmul.f32 -1.442695, %v1205_v2 }
 0x5fc   :  { %1453 = vpow2.f32 %v1364_v8  ;;  %v1452_v16 = vpop.eup %1451 }
 0x5fd   :  { %v1229_v26 = vadd.f32 1.0, %v1452_v16 }
 0x5ff   :  { %v1241_v41 = vand.u32 2147483648, %v1229_v26  ;;  %vm1235_vm4 = vweird.f32 %v1229_v26  ;;  %v1239_v35 = vand.u32 2147483647, %v1229_v26 }
 0x601   :  { %v1242_v42 = vor.u32 1.1754944e-38, %v1241_v41  ;;  %vm1240_vm6 = vcmp.eq.f32.partialorder %v1239_v35, 8.507059e+37 }
 0x602   :  { %v1454_v63 = vpop.eup %1453 }
 0x603   :  { %v1209_v45 = vadd.f32 1.0, %v1454_v63 }
 0x605   :  { %1455 = vrcp.f32 %v1209_v45  ;;  %v1221_v48 = vand.u32 2147483648, %v1209_v45  ;;  %v1219_v28 = vand.u32 2147483647, %v1209_v45  ;;  %vm1215_vm0 = vweird.f32 %v1209_v45 }
 0x606   :  { %1457 = vrcp.f32 %v1229_v26 }
 0x607   :  { %v1222_v40 = vor.u32 1.1754944e-38, %v1221_v48  ;;  %vm1220_vm2 = vcmp.eq.f32.partialorder %v1219_v28, 8.507059e+37 }
 0x60b   :  { %v1456_v15 = vpop.eup %1455 }
 0x60c   :  { %v1458_v11 = vpop.eup %1457  ;;  %v1211_v17 = vmul.f32 %v1456_v15, %v1209_v45  ;;  %vm1216_vm15 = vweird.f32 %v1456_v15 }
 0x60d   :  { %v1231_v31 = vmul.f32 %v1458_v11, %v1229_v26  ;;  %vm1217_vm1 = vmor %vm1215_vm0, %vm1216_vm15  ;;  %vm1236_vm3 = vweird.f32 %v1458_v11 }
 0x60e   :  { %v1212_v62 = vsub.f32 1.0, %v1211_v17  ;;  %vm1237_vm5 = vmor %vm1235_vm4, %vm1236_vm3 }
 0x60f   :  { %v1232_v6 = vsub.f32 1.0, %v1231_v31 }
 0x610   :  { %v1213_v7 = vmul.f32 %v1456_v15, %v1212_v62 }
 0x611   :  { %v1233_v32 = vmul.f32 %v1458_v11, %v1232_v6 }
 0x612   :  { %v1214_v46 = vadd.f32 %v1456_v15, %v1213_v7 }
 0x613   :  { %v1234_v22 = vadd.f32 %v1458_v11, %v1233_v32 }
 0x614   :  { %v1218_v14 = vsel %vm1217_vm1, %v1456_v15, %v1214_v46 }
 0x615   :  { %v1223_v25 = vsel %vm1220_vm2, %v1222_v40, %v1218_v14  ;;  %v1238_v57 = vsel %vm1237_vm5, %v1458_v11, %v1234_v22 }
 0x616   :  { %v1246_v0 = vmul.f32 %v1245_v51, %v1223_v25  ;;  %v1243_v59 = vsel %vm1240_vm6, %v1242_v42, %v1238_v57 }
 0x618   :  { %v1247_v43 = vadd.f32 %v1246_v0, %v2448_v23 }
 0x61a   :  { %1459 = vtanh.f32 %v1247_v43 }
 0x620   :  { %v1460_v21 = vpop.eup %1459 }
 0x621   :  { %v1249_v36 = vsub.f32 %v2373_v55, %v1460_v21 }
 0x623   :  { %v1250_v61 = vmul.f32 %v1249_v36, %v1243_v59 }
 0x625   :  { %v1251_v1 = vadd.f32 %v1460_v21, %v1250_v61 }
 0x627   :  { %v1258_v4 = vsel %vm1257_vm7, %v1251_v1, %v2373_v55 }
 0x628   :  { %1276 = vmatmul.f32.vlgmr.msra.gmra.mxu2 %v1258_v4 }
 0x6ab   :  { %v1277_v19 = vpop.f32.mrf.mxu2 }
 0x6ac   :  { %v1278_v24 = vadd.f32 %v1380_v10, %v1277_v19 }
 0x6ae   :  { %1307 = vst [vmem:[%s2399_s4] sm:$0xff] %v1278_v24  ;;  %1280 = vmax.xlane.f32.xlu1 %v1278_v24 }
 0x721   :  { %v1281_v29 = vpop.xlane.xlu1 %1280 }
 0x722   :  { %v1282_v33 = vsub.f32 %v1278_v24, %v1281_v29 }
 0x724   :  { %v1283_v34 = vmul.f32 1.442695, %v1282_v33 }
 0x726   :  { %1461 = vpow2.f32 %v1283_v34 }
 0x72c   :  { %v1462_v30 = vpop.eup %1461 }
 0x72d   :  { %1285 = vadd.xlane.f32.xlu2 %v1462_v30 }
 0x7a0   :  { %v1286_v27 = vpop.xlane.xlu2 %1285 }
 0x7a1   :  { %1463 = vlog2.f32 %v1286_v27 }
 0x7a7   :  { %v1464_v55 = vpop.eup %1463 }
 0x7a8   :  { %v1288_v49 = vmul.f32 0.6931472, %v1464_v55 }
 0x7aa   :  { %v1289_v37 = vadd.f32 %v1288_v49, %v1281_v29 }
 0x7ac   :  { %v1296_v52 = vsub.f32 %v1289_v37, %v1278_v24 }
 0x7ae   :  { %v1297_v56 = vmul.f32 %v1366_v54, %v1296_v52 }
 0x7b0   :  { %1298 = vadd.xlane.f32.xlu0 %v1297_v56 }
 0x823   :  { %v1299_v38 = vpop.xlane.xlu0 %1298 }
 0x824   :  { %v1300_v58 = vrot.slane %v1299_v38, 4 }
 0x826   :  { %v1301_v60 = vadd.f32 %v1300_v58, %v1299_v38 }
 0x828   :  { %v1302_v2 = vrot.slane %v1301_v60, 2 }
 0x82a   :  { %v1303_v3 = vadd.f32 %v1302_v2, %v1301_v60 }
 0x82c   :  { %v1304_v8 = vrot.slane %v1303_v3, 1 }
 0x82e   :  { %v1305_v9 = vadd.f32 %v1304_v8, %v1303_v3 }
 0x830   :  { %v1306_v47 = vmul.f32 0.5, %v1305_v9 }
 0x832   :  { %1308 = vst [vmem:[%s2399_s4 + $0x8] sm:$0xff] %v1306_v47 }
 0x833   :  { %1313 = vsyncpa [#allocation3], 1 }
 0x834   :  { %1314 = vsyncpa [#allocation5], 1 }

</bundles_post_ra>
